<compile_context>
chip_gen: v6e
topology: v6e:2x2x1
jax: 0.10.0
libtpu: 0.0.40
codegen_flags: <defaults>
</compile_context>

<pallas_src>
import math

import jax
import jax.numpy as jnp
import numpy as np
from jax.experimental import pallas as pl
from jax.experimental.pallas import tpu as pltpu

# ---- small, module-consistent dimensions -----------------------------------
B, T, E = 2, 8, 32          # batch, sequence length, word_embedding_dimension
H = 32                      # hidden_dim
D = 2 * H                   # bidirectional feature dim (hidden_dim * 2)
NH = 8                      # num_heads of SelfAttention
DH = D // NH                # head dim
C = 2                       # num_classes
TB = T * B                  # flattened (time-major) row count: row = t*B + b
NR = NH * TB                # heads-as-rows row count (128)

NEG_INF = -1e30
F32 = jnp.float32


# ---------------------------------------------------------------------------
# Single fused kernel (no grid): BiLSTM -> alpha pooling -> MHA -> sum -> fc
# ---------------------------------------------------------------------------
def fused_kernel(x_ref, m_ref,
                 w_in_ref, b_in_ref, w_hh_ref, att_w_ref,
                 wqkv_ref, bqkv_ref, wo_ref, bo_ref, wfc_ref, bfc_ref,
                 rep_ref, rept_ref, hmask_ref, bias_ref, sb_ref, pool_ref,
                 out_ref, u_s):
    # ---- hoisted joint (fwd|bwd) input projection: ONE (TB,2E)@(2E,8H) matmul
    # kept as a traced value (a few vregs), sliced statically inside the loop.
    z_all = jnp.dot(x_ref[...], w_in_ref[...],
                    preferred_element_type=F32) + b_in_ref[...]        # (TB, 8H)
    m_all = m_ref[...]            # (TB, 2H) validity: fwd lanes=t, bwd lanes=T-1-t
    w_hh = w_hh_ref[...]          # (2H, 8H) block-diagonal fused recurrent weights

    h = jnp.zeros((B, 2 * H), F32)          # [h_fwd | h_bwd]
    c = jnp.zeros((B, 2 * H), F32)
    for t in range(T):                      # static unroll; only h@w_hh is serial
        tb = T - 1 - t                      # bwd direction processes reversed time
        z = z_all[t * B:(t + 1) * B, :] + jnp.dot(h, w_hh,
                                                  preferred_element_type=F32)
        # gate-major packed columns: [i_f i_b | f_f f_b | o_f o_b | g_f g_b]
        sig = jax.nn.sigmoid(z[:, 0:6 * H])          # one EUP pass for i,f,o
        g = jnp.tanh(z[:, 6 * H:8 * H])              # one EUP pass for g
        i_g = sig[:, 0:2 * H]
        f_g = sig[:, 2 * H:4 * H]
        o_g = sig[:, 4 * H:6 * H]
        c_new = f_g * c + i_g * g
        h_new = o_g * jnp.tanh(c_new)
        m = m_all[t * B:(t + 1) * B, :]              # (B, 2H) per-direction mask
        y = m * h_new                                # zero output past length
        h = y + (1.0 - m) * h                        # freeze state past length
        c = m * c_new + (1.0 - m) * c
        u_s[pl.ds(t * B, B), pl.ds(0, H)] = y[:, 0:H]        # fwd half at time t
        u_s[pl.ds(tb * B, B), pl.ds(H, H)] = y[:, H:2 * H]   # bwd half at time tb

    u = u_s[...]                                             # (TB, D), row = t*B+b

    # ---- soft attention pooling: alpha = softmax_t(tanh(u) @ w) per batch ----
    score = jnp.dot(jnp.tanh(u), att_w_ref[...],
                    preferred_element_type=F32)              # (TB, 1) via MXU
    e = jnp.exp(score - jnp.max(score, axis=0, keepdims=True))   # shift-invariant
    denom = jnp.dot(sb_ref[...], e, preferred_element_type=F32)  # per-batch sums
    xw = u * (e * pl.reciprocal(denom, approx=True))             # (TB, D)

    # ---- multi-head self-attention, heads-as-rows (matmul retiling only) ----
    # TODO(synk): the SelfAttention class is not defined in the source module;
    # implementing standard 8-head Q/K/V + output-projection self-attention.
    qkv = jnp.dot(xw, wqkv_ref[...], preferred_element_type=F32) + bqkv_ref[...]
    rep = rep_ref[...]                                       # (NR, TB) replicate
    hmask = hmask_ref[...]                                   # (NR, D) head lanes
    qh = jnp.dot(rep, qkv[:, 0:D], preferred_element_type=F32) * hmask
    kh = jnp.dot(rep, qkv[:, D:2 * D], preferred_element_type=F32) * hmask
    vh = jnp.dot(rep, qkv[:, 2 * D:3 * D], preferred_element_type=F32) * hmask
    s = jax.lax.dot_general(qh, kh, (((1,), (1,)), ((), ())),
                            preferred_element_type=F32) * (1.0 / math.sqrt(DH))
    s = s + bias_ref[...]                 # -inf off the same-head/same-batch blocks
    p = jnp.exp(s - jnp.max(s, axis=-1, keepdims=True))
    p = p * pl.reciprocal(jnp.sum(p, axis=-1, keepdims=True), approx=True)
    ctx_big = jnp.dot(p, vh, preferred_element_type=F32)            # (NR, D)
    ctx = jnp.dot(rept_ref[...], ctx_big, preferred_element_type=F32)  # (TB, D)
    attn_out = jnp.dot(ctx, wo_ref[...], preferred_element_type=F32) + bo_ref[...]
    # TODO(synk): nn.Dropout is identity in eval mode; training dropout omitted.

    # ---- sum over time per batch (selection matmul) + classifier ----
    pooled = jnp.dot(pool_ref[...], attn_out, preferred_element_type=F32)  # (B, D)
    out_ref[...] = (jnp.dot(pooled, wfc_ref[...],
                            preferred_element_type=F32) + bfc_ref[...])


# ---------------------------------------------------------------------------
# Weight packing (done once, outside the kernel)
# ---------------------------------------------------------------------------
def _gate_cols(w):
    """Split (.., 4H) in PyTorch [i|f|g|o] order into blocks ordered [i,f,o,g]."""
    return [w[..., 0:H], w[..., H:2 * H], w[..., 3 * H:4 * H], w[..., 2 * H:3 * H]]


def _interleave(fwd_blocks, bwd_blocks):
    """-> columns [i_f,i_b,f_f,f_b,o_f,o_b,g_f,g_b]."""
    cols = []
    for fb, bb in zip(fwd_blocks, bwd_blocks):
        cols += [fb, bb]
    return jnp.concatenate(cols, axis=-1)


def pack_params(p):
    zE = jnp.zeros((E, H), F32)
    zH = jnp.zeros((H, H), F32)
    # input projection: rows 0:E read x_t (fwd), rows E:2E read x_{T-1-t} (bwd)
    w_in = _interleave(
        [jnp.concatenate([cb, zE], axis=0) for cb in _gate_cols(p["wih_f"])],
        [jnp.concatenate([zE, cb], axis=0) for cb in _gate_cols(p["wih_b"])])
    # recurrent weights: rows 0:H read h_fwd, rows H:2H read h_bwd
    w_hh = _interleave(
        [jnp.concatenate([cb, zH], axis=0) for cb in _gate_cols(p["whh_f"])],
        [jnp.concatenate([zH, cb], axis=0) for cb in _gate_cols(p["whh_b"])])
    b_in = _interleave(_gate_cols(p["b_f"]), _gate_cols(p["b_b"]))      # (1, 8H)
    wqkv = jnp.concatenate([p["wq"], p["wk"], p["wv"]], axis=1)         # (D, 3D)
    bqkv = jnp.concatenate([p["bq"], p["bk"], p["bv"]], axis=1)         # (1, 3D)
    return dict(w_in=w_in, w_hh=w_hh, b_in=b_in, att_w=p["att_w"].T,
                wqkv=wqkv, bqkv=bqkv, wo=p["wo"], bo=p["bo"],
                wfc=p["wfc"], bfc=p["bfc"])


def build_selectors():
    """Precomputed selector / bias constants (review item: no in-kernel iota/mod)."""
    r = np.arange(TB)
    hh = np.repeat(np.arange(NH), TB)          # head id of heads-as-rows row
    rr = np.tile(r, NH)                        # original row of heads-as-rows row
    rep = (rr[:, None] == r[None, :]).astype(np.float32)             # (NR, TB)
    rept = rep.T.copy()                                              # (TB, NR)
    head_mask = ((np.arange(D)[None, :] // DH) == hh[:, None]).astype(np.float32)
    same_head = hh[:, None] == hh[None, :]
    same_batch = (rr[:, None] % B) == (rr[None, :] % B)
    attn_bias = np.where(same_head & same_batch, 0.0, NEG_INF).astype(np.float32)
    sb_sel = ((r[:, None] % B) == (r[None, :] % B)).astype(np.float32)  # (TB, TB)
    pool_sel = (np.arange(B)[:, None] == (r[None, :] % B)).astype(np.float32)
    arrs = dict(rep=rep, rept=rept, head_mask=head_mask, attn_bias=attn_bias,
                sb_sel=sb_sel, pool_sel=pool_sel)
    return {k: jnp.asarray(v) for k, v in arrs.items()}


# ---------------------------------------------------------------------------
# Full forward
# ---------------------------------------------------------------------------
@jax.jit
def bilstm_attention_forward(token_embeddings, sentence_lengths, pk, sel):
    lengths = jnp.clip(sentence_lengths, 1, None)
    # TODO(synk): pad_packed_sequence pads to max(lengths); we assume max == T.
    x_tm = jnp.transpose(token_embeddings, (1, 0, 2))                  # (T, B, E)
    # row-block t holds [x_t | x_{T-1-t}] so the fused fwd/bwd cell slices once.
    x_pair = jnp.concatenate([x_tm, x_tm[::-1]], axis=-1).reshape(TB, 2 * E)
    m = (jnp.arange(T)[:, None] < lengths[None, :]).astype(F32)        # (T, B)
    mask_lanes = jnp.concatenate(
        [jnp.broadcast_to(m[:, :, None], (T, B, H)),
         jnp.broadcast_to(m[::-1][:, :, None], (T, B, H))],
        axis=-1).reshape(TB, 2 * H)
    return pl.pallas_call(
        fused_kernel,
        out_shape=jax.ShapeDtypeStruct((B, C), F32),
        scratch_shapes=[pltpu.VMEM((TB, D), F32)],     # concatenated BiLSTM output
    )(x_pair, mask_lanes,
      pk["w_in"], pk["b_in"], pk["w_hh"], pk["att_w"],
      pk["wqkv"], pk["bqkv"], pk["wo"], pk["bo"], pk["wfc"], pk["bfc"],
      sel["rep"], sel["rept"], sel["head_mask"], sel["attn_bias"],
      sel["sb_sel"], sel["pool_sel"])


# ---------------------------------------------------------------------------
# Deterministic synthetic parameters (raw per-direction, PyTorch gate order)
# ---------------------------------------------------------------------------
def init_params(key):
    ks = jax.random.split(key, 16)
    u = lambda k, shape: jax.random.uniform(k, shape, F32, -0.1, 0.1)
    return dict(
        wih_f=u(ks[0], (E, 4 * H)), whh_f=u(ks[1], (H, 4 * H)), b_f=u(ks[2], (1, 4 * H)),
        wih_b=u(ks[3], (E, 4 * H)), whh_b=u(ks[4], (H, 4 * H)), b_b=u(ks[5], (1, 4 * H)),
        att_w=u(ks[6], (1, D)),
        wq=u(ks[7], (D, D)), bq=u(ks[8], (1, D)),
        wk=u(ks[9], (D, D)), bk=u(ks[10], (1, D)),
        wv=u(ks[11], (D, D)), bv=u(ks[12], (1, D)),
        wfc=u(ks[13], (D, C)), bfc=jnp.zeros((1, C), F32),
        wo=u(ks[14], (D, D)), bo=u(ks[15], (1, D)),
    )


# ---------------------------------------------------------------------------
# Pure-JAX reference (HIGHEST-precision matmuls; only used as accuracy check)
# ---------------------------------------------------------------------------
HI = jax.lax.Precision.HIGHEST


def reference_forward(token_embeddings, sentence_lengths, p):
    lengths = jnp.clip(sentence_lengths, 1, None)
    xs = jnp.transpose(token_embeddings, (1, 0, 2))
    mask = (jnp.arange(T)[:, None] < lengths[None, :]).astype(F32)[:, :, None]

    def run(xs, mask, wih, whh, b):
        def step(carry, inp):
            h, c = carry
            xt, mt = inp
            z = jnp.dot(xt, wih, precision=HI) + jnp.dot(h, whh, precision=HI) + b
            i = jax.nn.sigmoid(z[:, :H]); f = jax.nn.sigmoid(z[:, H:2 * H])
            g = jnp.tanh(z[:, 2 * H:3 * H]); o = jax.nn.sigmoid(z[:, 3 * H:])
            c_new = f * c + i * g
            h_new = o * jnp.tanh(c_new)
            h2 = mt * h_new + (1 - mt) * h
            c2 = mt * c_new + (1 - mt) * c
            return (h2, c2), mt * h_new
        init = (jnp.zeros((B, H)), jnp.zeros((B, H)))
        _, ys = jax.lax.scan(step, init, (xs, mask))
        return ys

    yf = run(xs, mask, p["wih_f"], p["whh_f"], p["b_f"])
    yb = run(xs[::-1], mask[::-1], p["wih_b"], p["whh_b"], p["b_b"])[::-1]
    unpacked = jnp.transpose(jnp.concatenate([yf, yb], -1), (1, 0, 2))   # (B, T, D)

    M = jnp.tanh(unpacked)
    alpha = jax.nn.softmax(jnp.matmul(M, p["att_w"].T, precision=HI), axis=1)
    x = unpacked * alpha
    q = jnp.dot(x, p["wq"], precision=HI) + p["bq"]
    k = jnp.dot(x, p["wk"], precision=HI) + p["bk"]
    v = jnp.dot(x, p["wv"], precision=HI) + p["bv"]
    qh = q.reshape(B, T, NH, DH).transpose(0, 2, 1, 3)
    kh = k.reshape(B, T, NH, DH).transpose(0, 2, 1, 3)
    vh = v.reshape(B, T, NH, DH).transpose(0, 2, 1, 3)
    s = jnp.einsum("bhqd,bhkd->bhqk", qh, kh, precision=HI) / math.sqrt(DH)
    pm = jax.nn.softmax(s, axis=-1)
    ctx = jnp.einsum("bhqk,bhkd->bhqd", pm, vh,
                     precision=HI).transpose(0, 2, 1, 3).reshape(B, T, D)
    attn_out = jnp.dot(ctx, p["wo"], precision=HI) + p["bo"]
    pooled = jnp.sum(attn_out, axis=1)
    return jnp.dot(pooled, p["wfc"], precision=HI) + p["bfc"]


if __name__ == "__main__":
    key = jax.random.PRNGKey(0)
    kx, kp = jax.random.split(key)
    token_embeddings = jax.random.normal(kx, (B, T, E), F32)
    sentence_lengths = jnp.array([T, 5], jnp.int32)
    params = init_params(kp)

    packed = pack_params(params)
    selectors = build_selectors()

    out = bilstm_attention_forward(token_embeddings, sentence_lengths,
                                   packed, selectors)
    out = jax.block_until_ready(out)
    assert out.shape == (B, C)

    ref = reference_forward(token_embeddings, sentence_lengths, params)
    # Tolerance covers DEFAULT (possibly single-pass bf16) matmul precision in
    # the kernel plus approx reciprocals, vs. the HIGHEST-precision reference.
    np.testing.assert_allclose(np.asarray(out), np.asarray(ref),
                               rtol=3e-2, atol=3e-2)
    print("KERNEL_OK")
</pallas_src>

<mosaic_0001>
module attributes {stable_mosaic.version = 11 : i64} {
  func.func @fused_kernel(%arg0: memref<16x64xf32, #tpu.memory_space<vmem>>, %arg1: memref<16x64xf32, #tpu.memory_space<vmem>>, %arg2: memref<64x256xf32, #tpu.memory_space<vmem>>, %arg3: memref<1x256xf32, #tpu.memory_space<vmem>>, %arg4: memref<64x256xf32, #tpu.memory_space<vmem>>, %arg5: memref<64x1xf32, #tpu.memory_space<vmem>>, %arg6: memref<64x192xf32, #tpu.memory_space<vmem>>, %arg7: memref<1x192xf32, #tpu.memory_space<vmem>>, %arg8: memref<64x64xf32, #tpu.memory_space<vmem>>, %arg9: memref<1x64xf32, #tpu.memory_space<vmem>>, %arg10: memref<64x2xf32, #tpu.memory_space<vmem>>, %arg11: memref<1x2xf32, #tpu.memory_space<vmem>>, %arg12: memref<128x16xf32, #tpu.memory_space<vmem>>, %arg13: memref<16x128xf32, #tpu.memory_space<vmem>>, %arg14: memref<128x64xf32, #tpu.memory_space<vmem>>, %arg15: memref<128x128xf32, #tpu.memory_space<vmem>>, %arg16: memref<16x16xf32, #tpu.memory_space<vmem>>, %arg17: memref<2x16xf32, #tpu.memory_space<vmem>>, %arg18: memref<2x2xf32, #tpu.memory_space<vmem>>, %arg19: memref<16x64xf32, #tpu.memory_space<vmem>>) attributes {dimension_semantics = [], scalar_prefetch = 0 : i64, scratch_operands = 1 : i64, tpu.core_type = #tpu.core_type<tc>} {
    %c0 = arith.constant 0 : index
    %c0_0 = arith.constant 0 : index
    %0 = vector.load %arg0[%c0, %c0_0] : memref<16x64xf32, #tpu.memory_space<vmem>>, vector<16x64xf32>
    %c0_1 = arith.constant 0 : index
    %c0_2 = arith.constant 0 : index
    %1 = vector.load %arg2[%c0_1, %c0_2] : memref<64x256xf32, #tpu.memory_space<vmem>>, vector<64x256xf32>
    %cst = arith.constant dense<0.000000e+00> : vector<16x256xf32>
    %2 = tpu.matmul %0, %1, %cst {dimension_numbers = #tpu.dot_dimension_numbers<[1], [0], [0], [1], [0, 0, 1, 1], [], []>} : vector<16x64xf32>, vector<64x256xf32>, vector<16x256xf32> -> vector<16x256xf32>
    %c0_3 = arith.constant 0 : index
    %c0_4 = arith.constant 0 : index
    %3 = vector.load %arg3[%c0_3, %c0_4] : memref<1x256xf32, #tpu.memory_space<vmem>>, vector<1x256xf32>
    %4 = vector.broadcast %3 : vector<1x256xf32> to vector<16x256xf32>
    %5 = arith.addf %2, %4 : vector<16x256xf32>
    %c0_5 = arith.constant 0 : index
    %c0_6 = arith.constant 0 : index
    %6 = vector.load %arg1[%c0_5, %c0_6] : memref<16x64xf32, #tpu.memory_space<vmem>>, vector<16x64xf32>
    %c0_7 = arith.constant 0 : index
    %c0_8 = arith.constant 0 : index
    %7 = vector.load %arg4[%c0_7, %c0_8] : memref<64x256xf32, #tpu.memory_space<vmem>>, vector<64x256xf32>
    %cst_9 = arith.constant 0.000000e+00 : f32
    %8 = vector.broadcast %cst_9 : f32 to vector<2x64xf32>
    %cst_10 = arith.constant 0.000000e+00 : f32
    %9 = vector.broadcast %cst_10 : f32 to vector<2x64xf32>
    %10 = vector.extract_strided_slice %5 {offsets = [0, 0], sizes = [2, 256], strides = [1, 1]} : vector<16x256xf32> to vector<2x256xf32>
    %cst_11 = arith.constant dense<0.000000e+00> : vector<2x256xf32>
    %11 = tpu.matmul %8, %7, %cst_11 {dimension_numbers = #tpu.dot_dimension_numbers<[1], [0], [0], [1], [0, 0, 1, 1], [], []>} : vector<2x64xf32>, vector<64x256xf32>, vector<2x256xf32> -> vector<2x256xf32>
    %12 = arith.addf %10, %11 : vector<2x256xf32>
    %13 = vector.extract_strided_slice %12 {offsets = [0, 0], sizes = [2, 192], strides = [1, 1]} : vector<2x256xf32> to vector<2x192xf32>
    %14 = arith.negf %13 : vector<2x192xf32>
    %15 = math.exp %14 : vector<2x192xf32>
    %cst_12 = arith.constant 1.000000e+00 : f32
    %16 = vector.broadcast %cst_12 : f32 to vector<2x192xf32>
    %17 = arith.addf %16, %15 : vector<2x192xf32>
    %18 = arith.divf %16, %17 : vector<2x192xf32>
    %19 = vector.extract_strided_slice %12 {offsets = [0, 192], sizes = [2, 64], strides = [1, 1]} : vector<2x256xf32> to vector<2x64xf32>
    %20 = math.tanh %19 : vector<2x64xf32>
    %21 = vector.extract_strided_slice %18 {offsets = [0, 0], sizes = [2, 64], strides = [1, 1]} : vector<2x192xf32> to vector<2x64xf32>
    %22 = vector.extract_strided_slice %18 {offsets = [0, 64], sizes = [2, 64], strides = [1, 1]} : vector<2x192xf32> to vector<2x64xf32>
    %23 = vector.extract_strided_slice %18 {offsets = [0, 128], sizes = [2, 64], strides = [1, 1]} : vector<2x192xf32> to vector<2x64xf32>
    %24 = arith.mulf %22, %9 : vector<2x64xf32>
    %25 = arith.mulf %21, %20 : vector<2x64xf32>
    %26 = arith.addf %24, %25 : vector<2x64xf32>
    %27 = math.tanh %26 : vector<2x64xf32>
    %28 = arith.mulf %23, %27 : vector<2x64xf32>
    %29 = vector.extract_strided_slice %6 {offsets = [0, 0], sizes = [2, 64], strides = [1, 1]} : vector<16x64xf32> to vector<2x64xf32>
    %30 = arith.mulf %29, %28 : vector<2x64xf32>
    %cst_13 = arith.constant 1.000000e+00 : f32
    %31 = vector.broadcast %cst_13 : f32 to vector<2x64xf32>
    %32 = arith.subf %31, %29 : vector<2x64xf32>
    %33 = arith.mulf %32, %8 : vector<2x64xf32>
    %34 = arith.addf %30, %33 : vector<2x64xf32>
    %35 = arith.mulf %29, %26 : vector<2x64xf32>
    %cst_14 = arith.constant 1.000000e+00 : f32
    %36 = vector.broadcast %cst_14 : f32 to vector<2x64xf32>
    %37 = arith.subf %36, %29 : vector<2x64xf32>
    %38 = arith.mulf %37, %9 : vector<2x64xf32>
    %39 = arith.addf %35, %38 : vector<2x64xf32>
    %40 = vector.extract_strided_slice %30 {offsets = [0, 0], sizes = [2, 32], strides = [1, 1]} : vector<2x64xf32> to vector<2x32xf32>
    %c0_15 = arith.constant 0 : index
    %c0_16 = arith.constant 0 : index
    %41 = vector.load %arg19[%c0_15, %c0_16] : memref<16x64xf32, #tpu.memory_space<vmem>>, vector<2x32xf32>
    tpu.vector_store %arg19[%c0_15, %c0_16], %40 {strides = array<i32>} : memref<16x64xf32, #tpu.memory_space<vmem>>, vector<2x32xf32>,
    %42 = vector.extract_strided_slice %30 {offsets = [0, 32], sizes = [2, 32], strides = [1, 1]} : vector<2x64xf32> to vector<2x32xf32>
    %c14 = arith.constant 14 : index
    %c32 = arith.constant 32 : index
    %43 = vector.load %arg19[%c14, %c32] : memref<16x64xf32, #tpu.memory_space<vmem>>, vector<2x32xf32>
    tpu.vector_store %arg19[%c14, %c32], %42 {strides = array<i32>} : memref<16x64xf32, #tpu.memory_space<vmem>>, vector<2x32xf32>,
    %44 = vector.extract_strided_slice %5 {offsets = [2, 0], sizes = [2, 256], strides = [1, 1]} : vector<16x256xf32> to vector<2x256xf32>
    %cst_17 = arith.constant dense<0.000000e+00> : vector<2x256xf32>
    %45 = tpu.matmul %34, %7, %cst_17 {dimension_numbers = #tpu.dot_dimension_numbers<[1], [0], [0], [1], [0, 0, 1, 1], [], []>} : vector<2x64xf32>, vector<64x256xf32>, vector<2x256xf32> -> vector<2x256xf32>
    %46 = arith.addf %44, %45 : vector<2x256xf32>
    %47 = vector.extract_strided_slice %46 {offsets = [0, 0], sizes = [2, 192], strides = [1, 1]} : vector<2x256xf32> to vector<2x192xf32>
    %48 = arith.negf %47 : vector<2x192xf32>
    %49 = math.exp %48 : vector<2x192xf32>
    %cst_18 = arith.constant 1.000000e+00 : f32
    %50 = vector.broadcast %cst_18 : f32 to vector<2x192xf32>
    %51 = arith.addf %50, %49 : vector<2x192xf32>
    %52 = arith.divf %50, %51 : vector<2x192xf32>
    %53 = vector.extract_strided_slice %46 {offsets = [0, 192], sizes = [2, 64], strides = [1, 1]} : vector<2x256xf32> to vector<2x64xf32>
    %54 = math.tanh %53 : vector<2x64xf32>
    %55 = vector.extract_strided_slice %52 {offsets = [0, 0], sizes = [2, 64], strides = [1, 1]} : vector<2x192xf32> to vector<2x64xf32>
    %56 = vector.extract_strided_slice %52 {offsets = [0, 64], sizes = [2, 64], strides = [1, 1]} : vector<2x192xf32> to vector<2x64xf32>
    %57 = vector.extract_strided_slice %52 {offsets = [0, 128], sizes = [2, 64], strides = [1, 1]} : vector<2x192xf32> to vector<2x64xf32>
    %58 = arith.mulf %56, %39 : vector<2x64xf32>
    %59 = arith.mulf %55, %54 : vector<2x64xf32>
    %60 = arith.addf %58, %59 : vector<2x64xf32>
    %61 = math.tanh %60 : vector<2x64xf32>
    %62 = arith.mulf %57, %61 : vector<2x64xf32>
    %63 = vector.extract_strided_slice %6 {offsets = [2, 0], sizes = [2, 64], strides = [1, 1]} : vector<16x64xf32> to vector<2x64xf32>
    %64 = arith.mulf %63, %62 : vector<2x64xf32>
    %cst_19 = arith.constant 1.000000e+00 : f32
    %65 = vector.broadcast %cst_19 : f32 to vector<2x64xf32>
    %66 = arith.subf %65, %63 : vector<2x64xf32>
    %67 = arith.mulf %66, %34 : vector<2x64xf32>
    %68 = arith.addf %64, %67 : vector<2x64xf32>
    %69 = arith.mulf %63, %60 : vector<2x64xf32>
    %cst_20 = arith.constant 1.000000e+00 : f32
    %70 = vector.broadcast %cst_20 : f32 to vector<2x64xf32>
    %71 = arith.subf %70, %63 : vector<2x64xf32>
    %72 = arith.mulf %71, %39 : vector<2x64xf32>
    %73 = arith.addf %69, %72 : vector<2x64xf32>
    %74 = vector.extract_strided_slice %64 {offsets = [0, 0], sizes = [2, 32], strides = [1, 1]} : vector<2x64xf32> to vector<2x32xf32>
    %c2 = arith.constant 2 : index
    %c0_21 = arith.constant 0 : index
    %75 = vector.load %arg19[%c2, %c0_21] : memref<16x64xf32, #tpu.memory_space<vmem>>, vector<2x32xf32>
    tpu.vector_store %arg19[%c2, %c0_21], %74 {strides = array<i32>} : memref<16x64xf32, #tpu.memory_space<vmem>>, vector<2x32xf32>,
    %76 = vector.extract_strided_slice %64 {offsets = [0, 32], sizes = [2, 32], strides = [1, 1]} : vector<2x64xf32> to vector<2x32xf32>
    %c12 = arith.constant 12 : index
    %c32_22 = arith.constant 32 : index
    %77 = vector.load %arg19[%c12, %c32_22] : memref<16x64xf32, #tpu.memory_space<vmem>>, vector<2x32xf32>
    tpu.vector_store %arg19[%c12, %c32_22], %76 {strides = array<i32>} : memref<16x64xf32, #tpu.memory_space<vmem>>, vector<2x32xf32>,
    %78 = vector.extract_strided_slice %5 {offsets = [4, 0], sizes = [2, 256], strides = [1, 1]} : vector<16x256xf32> to vector<2x256xf32>
    %cst_23 = arith.constant dense<0.000000e+00> : vector<2x256xf32>
    %79 = tpu.matmul %68, %7, %cst_23 {dimension_numbers = #tpu.dot_dimension_numbers<[1], [0], [0], [1], [0, 0, 1, 1], [], []>} : vector<2x64xf32>, vector<64x256xf32>, vector<2x256xf32> -> vector<2x256xf32>
    %80 = arith.addf %78, %79 : vector<2x256xf32>
    %81 = vector.extract_strided_slice %80 {offsets = [0, 0], sizes = [2, 192], strides = [1, 1]} : vector<2x256xf32> to vector<2x192xf32>
    %82 = arith.negf %81 : vector<2x192xf32>
    %83 = math.exp %82 : vector<2x192xf32>
    %cst_24 = arith.constant 1.000000e+00 : f32
    %84 = vector.broadcast %cst_24 : f32 to vector<2x192xf32>
    %85 = arith.addf %84, %83 : vector<2x192xf32>
    %86 = arith.divf %84, %85 : vector<2x192xf32>
    %87 = vector.extract_strided_slice %80 {offsets = [0, 192], sizes = [2, 64], strides = [1, 1]} : vector<2x256xf32> to vector<2x64xf32>
    %88 = math.tanh %87 : vector<2x64xf32>
    %89 = vector.extract_strided_slice %86 {offsets = [0, 0], sizes = [2, 64], strides = [1, 1]} : vector<2x192xf32> to vector<2x64xf32>
    %90 = vector.extract_strided_slice %86 {offsets = [0, 64], sizes = [2, 64], strides = [1, 1]} : vector<2x192xf32> to vector<2x64xf32>
    %91 = vector.extract_strided_slice %86 {offsets = [0, 128], sizes = [2, 64], strides = [1, 1]} : vector<2x192xf32> to vector<2x64xf32>
    %92 = arith.mulf %90, %73 : vector<2x64xf32>
    %93 = arith.mulf %89, %88 : vector<2x64xf32>
    %94 = arith.addf %92, %93 : vector<2x64xf32>
    %95 = math.tanh %94 : vector<2x64xf32>
    %96 = arith.mulf %91, %95 : vector<2x64xf32>
    %97 = vector.extract_strided_slice %6 {offsets = [4, 0], sizes = [2, 64], strides = [1, 1]} : vector<16x64xf32> to vector<2x64xf32>
    %98 = arith.mulf %97, %96 : vector<2x64xf32>
    %cst_25 = arith.constant 1.000000e+00 : f32
    %99 = vector.broadcast %cst_25 : f32 to vector<2x64xf32>
    %100 = arith.subf %99, %97 : vector<2x64xf32>
    %101 = arith.mulf %100, %68 : vector<2x64xf32>
    %102 = arith.addf %98, %101 : vector<2x64xf32>
    %103 = arith.mulf %97, %94 : vector<2x64xf32>
    %cst_26 = arith.constant 1.000000e+00 : f32
    %104 = vector.broadcast %cst_26 : f32 to vector<2x64xf32>
    %105 = arith.subf %104, %97 : vector<2x64xf32>
    %106 = arith.mulf %105, %73 : vector<2x64xf32>
    %107 = arith.addf %103, %106 : vector<2x64xf32>
    %108 = vector.extract_strided_slice %98 {offsets = [0, 0], sizes = [2, 32], strides = [1, 1]} : vector<2x64xf32> to vector<2x32xf32>
    %c4 = arith.constant 4 : index
    %c0_27 = arith.constant 0 : index
    %109 = vector.load %arg19[%c4, %c0_27] : memref<16x64xf32, #tpu.memory_space<vmem>>, vector<2x32xf32>
    tpu.vector_store %arg19[%c4, %c0_27], %108 {strides = array<i32>} : memref<16x64xf32, #tpu.memory_space<vmem>>, vector<2x32xf32>,
    %110 = vector.extract_strided_slice %98 {offsets = [0, 32], sizes = [2, 32], strides = [1, 1]} : vector<2x64xf32> to vector<2x32xf32>
    %c10 = arith.constant 10 : index
    %c32_28 = arith.constant 32 : index
    %111 = vector.load %arg19[%c10, %c32_28] : memref<16x64xf32, #tpu.memory_space<vmem>>, vector<2x32xf32>
    tpu.vector_store %arg19[%c10, %c32_28], %110 {strides = array<i32>} : memref<16x64xf32, #tpu.memory_space<vmem>>, vector<2x32xf32>,
    %112 = vector.extract_strided_slice %5 {offsets = [6, 0], sizes = [2, 256], strides = [1, 1]} : vector<16x256xf32> to vector<2x256xf32>
    %cst_29 = arith.constant dense<0.000000e+00> : vector<2x256xf32>
    %113 = tpu.matmul %102, %7, %cst_29 {dimension_numbers = #tpu.dot_dimension_numbers<[1], [0], [0], [1], [0, 0, 1, 1], [], []>} : vector<2x64xf32>, vector<64x256xf32>, vector<2x256xf32> -> vector<2x256xf32>
    %114 = arith.addf %112, %113 : vector<2x256xf32>
    %115 = vector.extract_strided_slice %114 {offsets = [0, 0], sizes = [2, 192], strides = [1, 1]} : vector<2x256xf32> to vector<2x192xf32>
    %116 = arith.negf %115 : vector<2x192xf32>
    %117 = math.exp %116 : vector<2x192xf32>
    %cst_30 = arith.constant 1.000000e+00 : f32
    %118 = vector.broadcast %cst_30 : f32 to vector<2x192xf32>
    %119 = arith.addf %118, %117 : vector<2x192xf32>
    %120 = arith.divf %118, %119 : vector<2x192xf32>
    %121 = vector.extract_strided_slice %114 {offsets = [0, 192], sizes = [2, 64], strides = [1, 1]} : vector<2x256xf32> to vector<2x64xf32>
    %122 = math.tanh %121 : vector<2x64xf32>
    %123 = vector.extract_strided_slice %120 {offsets = [0, 0], sizes = [2, 64], strides = [1, 1]} : vector<2x192xf32> to vector<2x64xf32>
    %124 = vector.extract_strided_slice %120 {offsets = [0, 64], sizes = [2, 64], strides = [1, 1]} : vector<2x192xf32> to vector<2x64xf32>
    %125 = vector.extract_strided_slice %120 {offsets = [0, 128], sizes = [2, 64], strides = [1, 1]} : vector<2x192xf32> to vector<2x64xf32>
    %126 = arith.mulf %124, %107 : vector<2x64xf32>
    %127 = arith.mulf %123, %122 : vector<2x64xf32>
    %128 = arith.addf %126, %127 : vector<2x64xf32>
    %129 = math.tanh %128 : vector<2x64xf32>
    %130 = arith.mulf %125, %129 : vector<2x64xf32>
    %131 = vector.extract_strided_slice %6 {offsets = [6, 0], sizes = [2, 64], strides = [1, 1]} : vector<16x64xf32> to vector<2x64xf32>
    %132 = arith.mulf %131, %130 : vector<2x64xf32>
    %cst_31 = arith.constant 1.000000e+00 : f32
    %133 = vector.broadcast %cst_31 : f32 to vector<2x64xf32>
    %134 = arith.subf %133, %131 : vector<2x64xf32>
    %135 = arith.mulf %134, %102 : vector<2x64xf32>
    %136 = arith.addf %132, %135 : vector<2x64xf32>
    %137 = arith.mulf %131, %128 : vector<2x64xf32>
    %cst_32 = arith.constant 1.000000e+00 : f32
    %138 = vector.broadcast %cst_32 : f32 to vector<2x64xf32>
    %139 = arith.subf %138, %131 : vector<2x64xf32>
    %140 = arith.mulf %139, %107 : vector<2x64xf32>
    %141 = arith.addf %137, %140 : vector<2x64xf32>
    %142 = vector.extract_strided_slice %132 {offsets = [0, 0], sizes = [2, 32], strides = [1, 1]} : vector<2x64xf32> to vector<2x32xf32>
    %c6 = arith.constant 6 : index
    %c0_33 = arith.constant 0 : index
    %143 = vector.load %arg19[%c6, %c0_33] : memref<16x64xf32, #tpu.memory_space<vmem>>, vector<2x32xf32>
    tpu.vector_store %arg19[%c6, %c0_33], %142 {strides = array<i32>} : memref<16x64xf32, #tpu.memory_space<vmem>>, vector<2x32xf32>,
    %144 = vector.extract_strided_slice %132 {offsets = [0, 32], sizes = [2, 32], strides = [1, 1]} : vector<2x64xf32> to vector<2x32xf32>
    %c8 = arith.constant 8 : index
    %c32_34 = arith.constant 32 : index
    %145 = vector.load %arg19[%c8, %c32_34] : memref<16x64xf32, #tpu.memory_space<vmem>>, vector<2x32xf32>
    tpu.vector_store %arg19[%c8, %c32_34], %144 {strides = array<i32>} : memref<16x64xf32, #tpu.memory_space<vmem>>, vector<2x32xf32>,
    %146 = vector.extract_strided_slice %5 {offsets = [8, 0], sizes = [2, 256], strides = [1, 1]} : vector<16x256xf32> to vector<2x256xf32>
    %cst_35 = arith.constant dense<0.000000e+00> : vector<2x256xf32>
    %147 = tpu.matmul %136, %7, %cst_35 {dimension_numbers = #tpu.dot_dimension_numbers<[1], [0], [0], [1], [0, 0, 1, 1], [], []>} : vector<2x64xf32>, vector<64x256xf32>, vector<2x256xf32> -> vector<2x256xf32>
    %148 = arith.addf %146, %147 : vector<2x256xf32>
    %149 = vector.extract_strided_slice %148 {offsets = [0, 0], sizes = [2, 192], strides = [1, 1]} : vector<2x256xf32> to vector<2x192xf32>
    %150 = arith.negf %149 : vector<2x192xf32>
    %151 = math.exp %150 : vector<2x192xf32>
    %cst_36 = arith.constant 1.000000e+00 : f32
    %152 = vector.broadcast %cst_36 : f32 to vector<2x192xf32>
    %153 = arith.addf %152, %151 : vector<2x192xf32>
    %154 = arith.divf %152, %153 : vector<2x192xf32>
    %155 = vector.extract_strided_slice %148 {offsets = [0, 192], sizes = [2, 64], strides = [1, 1]} : vector<2x256xf32> to vector<2x64xf32>
    %156 = math.tanh %155 : vector<2x64xf32>
    %157 = vector.extract_strided_slice %154 {offsets = [0, 0], sizes = [2, 64], strides = [1, 1]} : vector<2x192xf32> to vector<2x64xf32>
    %158 = vector.extract_strided_slice %154 {offsets = [0, 64], sizes = [2, 64], strides = [1, 1]} : vector<2x192xf32> to vector<2x64xf32>
    %159 = vector.extract_strided_slice %154 {offsets = [0, 128], sizes = [2, 64], strides = [1, 1]} : vector<2x192xf32> to vector<2x64xf32>
    %160 = arith.mulf %158, %141 : vector<2x64xf32>
    %161 = arith.mulf %157, %156 : vector<2x64xf32>
    %162 = arith.addf %160, %161 : vector<2x64xf32>
    %163 = math.tanh %162 : vector<2x64xf32>
    %164 = arith.mulf %159, %163 : vector<2x64xf32>
    %165 = vector.extract_strided_slice %6 {offsets = [8, 0], sizes = [2, 64], strides = [1, 1]} : vector<16x64xf32> to vector<2x64xf32>
    %166 = arith.mulf %165, %164 : vector<2x64xf32>
    %cst_37 = arith.constant 1.000000e+00 : f32
    %167 = vector.broadcast %cst_37 : f32 to vector<2x64xf32>
    %168 = arith.subf %167, %165 : vector<2x64xf32>
    %169 = arith.mulf %168, %136 : vector<2x64xf32>
    %170 = arith.addf %166, %169 : vector<2x64xf32>
    %171 = arith.mulf %165, %162 : vector<2x64xf32>
    %cst_38 = arith.constant 1.000000e+00 : f32
    %172 = vector.broadcast %cst_38 : f32 to vector<2x64xf32>
    %173 = arith.subf %172, %165 : vector<2x64xf32>
    %174 = arith.mulf %173, %141 : vector<2x64xf32>
    %175 = arith.addf %171, %174 : vector<2x64xf32>
    %176 = vector.extract_strided_slice %166 {offsets = [0, 0], sizes = [2, 32], strides = [1, 1]} : vector<2x64xf32> to vector<2x32xf32>
    %c8_39 = arith.constant 8 : index
    %c0_40 = arith.constant 0 : index
    %177 = vector.load %arg19[%c8_39, %c0_40] : memref<16x64xf32, #tpu.memory_space<vmem>>, vector<2x32xf32>
    tpu.vector_store %arg19[%c8_39, %c0_40], %176 {strides = array<i32>} : memref<16x64xf32, #tpu.memory_space<vmem>>, vector<2x32xf32>,
    %178 = vector.extract_strided_slice %166 {offsets = [0, 32], sizes = [2, 32], strides = [1, 1]} : vector<2x64xf32> to vector<2x32xf32>
    %c6_41 = arith.constant 6 : index
    %c32_42 = arith.constant 32 : index
    %179 = vector.load %arg19[%c6_41, %c32_42] : memref<16x64xf32, #tpu.memory_space<vmem>>, vector<2x32xf32>
    tpu.vector_store %arg19[%c6_41, %c32_42], %178 {strides = array<i32>} : memref<16x64xf32, #tpu.memory_space<vmem>>, vector<2x32xf32>,
    %180 = vector.extract_strided_slice %5 {offsets = [10, 0], sizes = [2, 256], strides = [1, 1]} : vector<16x256xf32> to vector<2x256xf32>
    %cst_43 = arith.constant dense<0.000000e+00> : vector<2x256xf32>
    %181 = tpu.matmul %170, %7, %cst_43 {dimension_numbers = #tpu.dot_dimension_numbers<[1], [0], [0], [1], [0, 0, 1, 1], [], []>} : vector<2x64xf32>, vector<64x256xf32>, vector<2x256xf32> -> vector<2x256xf32>
    %182 = arith.addf %180, %181 : vector<2x256xf32>
    %183 = vector.extract_strided_slice %182 {offsets = [0, 0], sizes = [2, 192], strides = [1, 1]} : vector<2x256xf32> to vector<2x192xf32>
    %184 = arith.negf %183 : vector<2x192xf32>
    %185 = math.exp %184 : vector<2x192xf32>
    %cst_44 = arith.constant 1.000000e+00 : f32
    %186 = vector.broadcast %cst_44 : f32 to vector<2x192xf32>
    %187 = arith.addf %186, %185 : vector<2x192xf32>
    %188 = arith.divf %186, %187 : vector<2x192xf32>
    %189 = vector.extract_strided_slice %182 {offsets = [0, 192], sizes = [2, 64], strides = [1, 1]} : vector<2x256xf32> to vector<2x64xf32>
    %190 = math.tanh %189 : vector<2x64xf32>
    %191 = vector.extract_strided_slice %188 {offsets = [0, 0], sizes = [2, 64], strides = [1, 1]} : vector<2x192xf32> to vector<2x64xf32>
    %192 = vector.extract_strided_slice %188 {offsets = [0, 64], sizes = [2, 64], strides = [1, 1]} : vector<2x192xf32> to vector<2x64xf32>
    %193 = vector.extract_strided_slice %188 {offsets = [0, 128], sizes = [2, 64], strides = [1, 1]} : vector<2x192xf32> to vector<2x64xf32>
    %194 = arith.mulf %192, %175 : vector<2x64xf32>
    %195 = arith.mulf %191, %190 : vector<2x64xf32>
    %196 = arith.addf %194, %195 : vector<2x64xf32>
    %197 = math.tanh %196 : vector<2x64xf32>
    %198 = arith.mulf %193, %197 : vector<2x64xf32>
    %199 = vector.extract_strided_slice %6 {offsets = [10, 0], sizes = [2, 64], strides = [1, 1]} : vector<16x64xf32> to vector<2x64xf32>
    %200 = arith.mulf %199, %198 : vector<2x64xf32>
    %cst_45 = arith.constant 1.000000e+00 : f32
    %201 = vector.broadcast %cst_45 : f32 to vector<2x64xf32>
    %202 = arith.subf %201, %199 : vector<2x64xf32>
    %203 = arith.mulf %202, %170 : vector<2x64xf32>
    %204 = arith.addf %200, %203 : vector<2x64xf32>
    %205 = arith.mulf %199, %196 : vector<2x64xf32>
    %cst_46 = arith.constant 1.000000e+00 : f32
    %206 = vector.broadcast %cst_46 : f32 to vector<2x64xf32>
    %207 = arith.subf %206, %199 : vector<2x64xf32>
    %208 = arith.mulf %207, %175 : vector<2x64xf32>
    %209 = arith.addf %205, %208 : vector<2x64xf32>
    %210 = vector.extract_strided_slice %200 {offsets = [0, 0], sizes = [2, 32], strides = [1, 1]} : vector<2x64xf32> to vector<2x32xf32>
    %c10_47 = arith.constant 10 : index
    %c0_48 = arith.constant 0 : index
    %211 = vector.load %arg19[%c10_47, %c0_48] : memref<16x64xf32, #tpu.memory_space<vmem>>, vector<2x32xf32>
    tpu.vector_store %arg19[%c10_47, %c0_48], %210 {strides = array<i32>} : memref<16x64xf32, #tpu.memory_space<vmem>>, vector<2x32xf32>,
    %212 = vector.extract_strided_slice %200 {offsets = [0, 32], sizes = [2, 32], strides = [1, 1]} : vector<2x64xf32> to vector<2x32xf32>
    %c4_49 = arith.constant 4 : index
    %c32_50 = arith.constant 32 : index
    %213 = vector.load %arg19[%c4_49, %c32_50] : memref<16x64xf32, #tpu.memory_space<vmem>>, vector<2x32xf32>
    tpu.vector_store %arg19[%c4_49, %c32_50], %212 {strides = array<i32>} : memref<16x64xf32, #tpu.memory_space<vmem>>, vector<2x32xf32>,
    %214 = vector.extract_strided_slice %5 {offsets = [12, 0], sizes = [2, 256], strides = [1, 1]} : vector<16x256xf32> to vector<2x256xf32>
    %cst_51 = arith.constant dense<0.000000e+00> : vector<2x256xf32>
    %215 = tpu.matmul %204, %7, %cst_51 {dimension_numbers = #tpu.dot_dimension_numbers<[1], [0], [0], [1], [0, 0, 1, 1], [], []>} : vector<2x64xf32>, vector<64x256xf32>, vector<2x256xf32> -> vector<2x256xf32>
    %216 = arith.addf %214, %215 : vector<2x256xf32>
    %217 = vector.extract_strided_slice %216 {offsets = [0, 0], sizes = [2, 192], strides = [1, 1]} : vector<2x256xf32> to vector<2x192xf32>
    %218 = arith.negf %217 : vector<2x192xf32>
    %219 = math.exp %218 : vector<2x192xf32>
    %cst_52 = arith.constant 1.000000e+00 : f32
    %220 = vector.broadcast %cst_52 : f32 to vector<2x192xf32>
    %221 = arith.addf %220, %219 : vector<2x192xf32>
    %222 = arith.divf %220, %221 : vector<2x192xf32>
    %223 = vector.extract_strided_slice %216 {offsets = [0, 192], sizes = [2, 64], strides = [1, 1]} : vector<2x256xf32> to vector<2x64xf32>
    %224 = math.tanh %223 : vector<2x64xf32>
    %225 = vector.extract_strided_slice %222 {offsets = [0, 0], sizes = [2, 64], strides = [1, 1]} : vector<2x192xf32> to vector<2x64xf32>
    %226 = vector.extract_strided_slice %222 {offsets = [0, 64], sizes = [2, 64], strides = [1, 1]} : vector<2x192xf32> to vector<2x64xf32>
    %227 = vector.extract_strided_slice %222 {offsets = [0, 128], sizes = [2, 64], strides = [1, 1]} : vector<2x192xf32> to vector<2x64xf32>
    %228 = arith.mulf %226, %209 : vector<2x64xf32>
    %229 = arith.mulf %225, %224 : vector<2x64xf32>
    %230 = arith.addf %228, %229 : vector<2x64xf32>
    %231 = math.tanh %230 : vector<2x64xf32>
    %232 = arith.mulf %227, %231 : vector<2x64xf32>
    %233 = vector.extract_strided_slice %6 {offsets = [12, 0], sizes = [2, 64], strides = [1, 1]} : vector<16x64xf32> to vector<2x64xf32>
    %234 = arith.mulf %233, %232 : vector<2x64xf32>
    %cst_53 = arith.constant 1.000000e+00 : f32
    %235 = vector.broadcast %cst_53 : f32 to vector<2x64xf32>
    %236 = arith.subf %235, %233 : vector<2x64xf32>
    %237 = arith.mulf %236, %204 : vector<2x64xf32>
    %238 = arith.addf %234, %237 : vector<2x64xf32>
    %239 = arith.mulf %233, %230 : vector<2x64xf32>
    %cst_54 = arith.constant 1.000000e+00 : f32
    %240 = vector.broadcast %cst_54 : f32 to vector<2x64xf32>
    %241 = arith.subf %240, %233 : vector<2x64xf32>
    %242 = arith.mulf %241, %209 : vector<2x64xf32>
    %243 = arith.addf %239, %242 : vector<2x64xf32>
    %244 = vector.extract_strided_slice %234 {offsets = [0, 0], sizes = [2, 32], strides = [1, 1]} : vector<2x64xf32> to vector<2x32xf32>
    %c12_55 = arith.constant 12 : index
    %c0_56 = arith.constant 0 : index
    %245 = vector.load %arg19[%c12_55, %c0_56] : memref<16x64xf32, #tpu.memory_space<vmem>>, vector<2x32xf32>
    tpu.vector_store %arg19[%c12_55, %c0_56], %244 {strides = array<i32>} : memref<16x64xf32, #tpu.memory_space<vmem>>, vector<2x32xf32>,
    %246 = vector.extract_strided_slice %234 {offsets = [0, 32], sizes = [2, 32], strides = [1, 1]} : vector<2x64xf32> to vector<2x32xf32>
    %c2_57 = arith.constant 2 : index
    %c32_58 = arith.constant 32 : index
    %247 = vector.load %arg19[%c2_57, %c32_58] : memref<16x64xf32, #tpu.memory_space<vmem>>, vector<2x32xf32>
    tpu.vector_store %arg19[%c2_57, %c32_58], %246 {strides = array<i32>} : memref<16x64xf32, #tpu.memory_space<vmem>>, vector<2x32xf32>,
    %248 = vector.extract_strided_slice %5 {offsets = [14, 0], sizes = [2, 256], strides = [1, 1]} : vector<16x256xf32> to vector<2x256xf32>
    %cst_59 = arith.constant dense<0.000000e+00> : vector<2x256xf32>
    %249 = tpu.matmul %238, %7, %cst_59 {dimension_numbers = #tpu.dot_dimension_numbers<[1], [0], [0], [1], [0, 0, 1, 1], [], []>} : vector<2x64xf32>, vector<64x256xf32>, vector<2x256xf32> -> vector<2x256xf32>
    %250 = arith.addf %248, %249 : vector<2x256xf32>
    %251 = vector.extract_strided_slice %250 {offsets = [0, 0], sizes = [2, 192], strides = [1, 1]} : vector<2x256xf32> to vector<2x192xf32>
    %252 = arith.negf %251 : vector<2x192xf32>
    %253 = math.exp %252 : vector<2x192xf32>
    %cst_60 = arith.constant 1.000000e+00 : f32
    %254 = vector.broadcast %cst_60 : f32 to vector<2x192xf32>
    %255 = arith.addf %254, %253 : vector<2x192xf32>
    %256 = arith.divf %254, %255 : vector<2x192xf32>
    %257 = vector.extract_strided_slice %250 {offsets = [0, 192], sizes = [2, 64], strides = [1, 1]} : vector<2x256xf32> to vector<2x64xf32>
    %258 = math.tanh %257 : vector<2x64xf32>
    %259 = vector.extract_strided_slice %256 {offsets = [0, 0], sizes = [2, 64], strides = [1, 1]} : vector<2x192xf32> to vector<2x64xf32>
    %260 = vector.extract_strided_slice %256 {offsets = [0, 64], sizes = [2, 64], strides = [1, 1]} : vector<2x192xf32> to vector<2x64xf32>
    %261 = vector.extract_strided_slice %256 {offsets = [0, 128], sizes = [2, 64], strides = [1, 1]} : vector<2x192xf32> to vector<2x64xf32>
    %262 = arith.mulf %260, %243 : vector<2x64xf32>
    %263 = arith.mulf %259, %258 : vector<2x64xf32>
    %264 = arith.addf %262, %263 : vector<2x64xf32>
    %265 = math.tanh %264 : vector<2x64xf32>
    %266 = arith.mulf %261, %265 : vector<2x64xf32>
    %267 = vector.extract_strided_slice %6 {offsets = [14, 0], sizes = [2, 64], strides = [1, 1]} : vector<16x64xf32> to vector<2x64xf32>
    %268 = arith.mulf %267, %266 : vector<2x64xf32>
    %269 = vector.extract_strided_slice %268 {offsets = [0, 0], sizes = [2, 32], strides = [1, 1]} : vector<2x64xf32> to vector<2x32xf32>
    %c14_61 = arith.constant 14 : index
    %c0_62 = arith.constant 0 : index
    %270 = vector.load %arg19[%c14_61, %c0_62] : memref<16x64xf32, #tpu.memory_space<vmem>>, vector<2x32xf32>
    tpu.vector_store %arg19[%c14_61, %c0_62], %269 {strides = array<i32>} : memref<16x64xf32, #tpu.memory_space<vmem>>, vector<2x32xf32>,
    %271 = vector.extract_strided_slice %268 {offsets = [0, 32], sizes = [2, 32], strides = [1, 1]} : vector<2x64xf32> to vector<2x32xf32>
    %c0_63 = arith.constant 0 : index
    %c32_64 = arith.constant 32 : index
    %272 = vector.load %arg19[%c0_63, %c32_64] : memref<16x64xf32, #tpu.memory_space<vmem>>, vector<2x32xf32>
    tpu.vector_store %arg19[%c0_63, %c32_64], %271 {strides = array<i32>} : memref<16x64xf32, #tpu.memory_space<vmem>>, vector<2x32xf32>,
    %c0_65 = arith.constant 0 : index
    %c0_66 = arith.constant 0 : index
    %273 = vector.load %arg19[%c0_65, %c0_66] : memref<16x64xf32, #tpu.memory_space<vmem>>, vector<16x64xf32>
    %274 = math.tanh %273 : vector<16x64xf32>
    %c0_67 = arith.constant 0 : index
    %c0_68 = arith.constant 0 : index
    %275 = vector.load %arg5[%c0_67, %c0_68] : memref<64x1xf32, #tpu.memory_space<vmem>>, vector<64x1xf32>
    %cst_69 = arith.constant dense<0.000000e+00> : vector<16x1xf32>
    %276 = tpu.matmul %274, %275, %cst_69 {dimension_numbers = #tpu.dot_dimension_numbers<[1], [0], [0], [1], [0, 0, 1, 1], [], []>} : vector<16x64xf32>, vector<64x1xf32>, vector<16x1xf32> -> vector<16x1xf32>
    %cst_70 = arith.constant dense<0xFF800000> : vector<1xf32>
    %277 = vector.multi_reduction <maximumf>, %276, %cst_70 [0] : vector<16x1xf32> to vector<1xf32>
    %278 = vector.shape_cast %277 : vector<1xf32> to vector<1x1xf32>
    %279 = vector.broadcast %278 : vector<1x1xf32> to vector<16x1xf32>
    %280 = arith.subf %276, %279 : vector<16x1xf32>
    %281 = math.exp %280 : vector<16x1xf32>
    %c0_71 = arith.constant 0 : index
    %c0_72 = arith.constant 0 : index
    %282 = vector.load %arg16[%c0_71, %c0_72] : memref<16x16xf32, #tpu.memory_space<vmem>>, vector<16x16xf32>
    %cst_73 = arith.constant dense<0.000000e+00> : vector<16x1xf32>
    %283 = tpu.matmul %282, %281, %cst_73 {dimension_numbers = #tpu.dot_dimension_numbers<[1], [0], [0], [1], [0, 0, 1, 1], [], []>} : vector<16x16xf32>, vector<16x1xf32>, vector<16x1xf32> -> vector<16x1xf32>
    %284 = tpu.reciprocal %283 {approx = true} : vector<16x1xf32> -> vector<16x1xf32>
    %285 = arith.mulf %281, %284 : vector<16x1xf32>
    %286 = vector.broadcast %285 : vector<16x1xf32> to vector<16x64xf32>
    %287 = arith.mulf %273, %286 : vector<16x64xf32>
    %c0_74 = arith.constant 0 : index
    %c0_75 = arith.constant 0 : index
    %288 = vector.load %arg6[%c0_74, %c0_75] : memref<64x192xf32, #tpu.memory_space<vmem>>, vector<64x192xf32>
    %cst_76 = arith.constant dense<0.000000e+00> : vector<16x192xf32>
    %289 = tpu.matmul %287, %288, %cst_76 {dimension_numbers = #tpu.dot_dimension_numbers<[1], [0], [0], [1], [0, 0, 1, 1], [], []>} : vector<16x64xf32>, vector<64x192xf32>, vector<16x192xf32> -> vector<16x192xf32>
    %c0_77 = arith.constant 0 : index
    %c0_78 = arith.constant 0 : index
    %290 = vector.load %arg7[%c0_77, %c0_78] : memref<1x192xf32, #tpu.memory_space<vmem>>, vector<1x192xf32>
    %291 = vector.broadcast %290 : vector<1x192xf32> to vector<16x192xf32>
    %292 = arith.addf %289, %291 : vector<16x192xf32>
    %c0_79 = arith.constant 0 : index
    %c0_80 = arith.constant 0 : index
    %293 = vector.load %arg12[%c0_79, %c0_80] : memref<128x16xf32, #tpu.memory_space<vmem>>, vector<128x16xf32>
    %c0_81 = arith.constant 0 : index
    %c0_82 = arith.constant 0 : index
    %294 = vector.load %arg14[%c0_81, %c0_82] : memref<128x64xf32, #tpu.memory_space<vmem>>, vector<128x64xf32>
    %295 = vector.extract_strided_slice %292 {offsets = [0, 0], sizes = [16, 64], strides = [1, 1]} : vector<16x192xf32> to vector<16x64xf32>
    %cst_83 = arith.constant dense<0.000000e+00> : vector<128x64xf32>
    %296 = tpu.matmul %293, %295, %cst_83 {dimension_numbers = #tpu.dot_dimension_numbers<[1], [0], [0], [1], [0, 0, 1, 1], [], []>} : vector<128x16xf32>, vector<16x64xf32>, vector<128x64xf32> -> vector<128x64xf32>
    %297 = arith.mulf %296, %294 : vector<128x64xf32>
    %298 = vector.extract_strided_slice %292 {offsets = [0, 64], sizes = [16, 64], strides = [1, 1]} : vector<16x192xf32> to vector<16x64xf32>
    %cst_84 = arith.constant dense<0.000000e+00> : vector<128x64xf32>
    %299 = tpu.matmul %293, %298, %cst_84 {dimension_numbers = #tpu.dot_dimension_numbers<[1], [0], [0], [1], [0, 0, 1, 1], [], []>} : vector<128x16xf32>, vector<16x64xf32>, vector<128x64xf32> -> vector<128x64xf32>
    %300 = arith.mulf %299, %294 : vector<128x64xf32>
    %301 = vector.extract_strided_slice %292 {offsets = [0, 128], sizes = [16, 64], strides = [1, 1]} : vector<16x192xf32> to vector<16x64xf32>
    %cst_85 = arith.constant dense<0.000000e+00> : vector<128x64xf32>
    %302 = tpu.matmul %293, %301, %cst_85 {dimension_numbers = #tpu.dot_dimension_numbers<[1], [0], [0], [1], [0, 0, 1, 1], [], []>} : vector<128x16xf32>, vector<16x64xf32>, vector<128x64xf32> -> vector<128x64xf32>
    %303 = arith.mulf %302, %294 : vector<128x64xf32>
    %cst_86 = arith.constant dense<0.000000e+00> : vector<128x128xf32>
    %304 = tpu.matmul %297, %300, %cst_86 {dimension_numbers = #tpu.dot_dimension_numbers<[1], [1], [0], [0], [0, 0, 1, 0], [], []>} : vector<128x64xf32>, vector<128x64xf32>, vector<128x128xf32> -> vector<128x128xf32>
    %cst_87 = arith.constant 0.353553385 : f32
    %305 = vector.broadcast %cst_87 : f32 to vector<128x128xf32>
    %306 = arith.mulf %304, %305 : vector<128x128xf32>
    %c0_88 = arith.constant 0 : index
    %c0_89 = arith.constant 0 : index
    %307 = vector.load %arg15[%c0_88, %c0_89] : memref<128x128xf32, #tpu.memory_space<vmem>>, vector<128x128xf32>
    %308 = arith.addf %306, %307 : vector<128x128xf32>
    %cst_90 = arith.constant dense<0xFF800000> : vector<128xf32>
    %309 = vector.multi_reduction <maximumf>, %308, %cst_90 [1] : vector<128x128xf32> to vector<128xf32>
    %310 = vector.shape_cast %309 : vector<128xf32> to vector<128x1xf32>
    %311 = vector.broadcast %310 : vector<128x1xf32> to vector<128x128xf32>
    %312 = arith.subf %308, %311 : vector<128x128xf32>
    %313 = math.exp %312 : vector<128x128xf32>
    %cst_91 = arith.constant dense<0.000000e+00> : vector<128xf32>
    %314 = vector.multi_reduction <add>, %313, %cst_91 [1] : vector<128x128xf32> to vector<128xf32>
    %315 = vector.shape_cast %314 : vector<128xf32> to vector<128x1xf32>
    %316 = tpu.reciprocal %315 {approx = true} : vector<128x1xf32> -> vector<128x1xf32>
    %317 = vector.broadcast %316 : vector<128x1xf32> to vector<128x128xf32>
    %318 = arith.mulf %313, %317 : vector<128x128xf32>
    %cst_92 = arith.constant dense<0.000000e+00> : vector<128x64xf32>
    %319 = tpu.matmul %318, %303, %cst_92 {dimension_numbers = #tpu.dot_dimension_numbers<[1], [0], [0], [1], [0, 0, 1, 1], [], []>} : vector<128x128xf32>, vector<128x64xf32>, vector<128x64xf32> -> vector<128x64xf32>
    %c0_93 = arith.constant 0 : index
    %c0_94 = arith.constant 0 : index
    %320 = vector.load %arg13[%c0_93, %c0_94] : memref<16x128xf32, #tpu.memory_space<vmem>>, vector<16x128xf32>
    %cst_95 = arith.constant dense<0.000000e+00> : vector<16x64xf32>
    %321 = tpu.matmul %320, %319, %cst_95 {dimension_numbers = #tpu.dot_dimension_numbers<[1], [0], [0], [1], [0, 0, 1, 1], [], []>} : vector<16x128xf32>, vector<128x64xf32>, vector<16x64xf32> -> vector<16x64xf32>
    %c0_96 = arith.constant 0 : index
    %c0_97 = arith.constant 0 : index
    %322 = vector.load %arg8[%c0_96, %c0_97] : memref<64x64xf32, #tpu.memory_space<vmem>>, vector<64x64xf32>
    %cst_98 = arith.constant dense<0.000000e+00> : vector<16x64xf32>
    %323 = tpu.matmul %321, %322, %cst_98 {dimension_numbers = #tpu.dot_dimension_numbers<[1], [0], [0], [1], [0, 0, 1, 1], [], []>} : vector<16x64xf32>, vector<64x64xf32>, vector<16x64xf32> -> vector<16x64xf32>
    %c0_99 = arith.constant 0 : index
    %c0_100 = arith.constant 0 : index
    %324 = vector.load %arg9[%c0_99, %c0_100] : memref<1x64xf32, #tpu.memory_space<vmem>>, vector<1x64xf32>
    %325 = vector.broadcast %324 : vector<1x64xf32> to vector<16x64xf32>
    %326 = arith.addf %323, %325 : vector<16x64xf32>
    %c0_101 = arith.constant 0 : index
    %c0_102 = arith.constant 0 : index
    %327 = vector.load %arg17[%c0_101, %c0_102] : memref<2x16xf32, #tpu.memory_space<vmem>>, vector<2x16xf32>
    %cst_103 = arith.constant dense<0.000000e+00> : vector<2x64xf32>
    %328 = tpu.matmul %327, %326, %cst_103 {dimension_numbers = #tpu.dot_dimension_numbers<[1], [0], [0], [1], [0, 0, 1, 1], [], []>} : vector<2x16xf32>, vector<16x64xf32>, vector<2x64xf32> -> vector<2x64xf32>
    %c0_104 = arith.constant 0 : index
    %c0_105 = arith.constant 0 : index
    %329 = vector.load %arg10[%c0_104, %c0_105] : memref<64x2xf32, #tpu.memory_space<vmem>>, vector<64x2xf32>
    %cst_106 = arith.constant dense<0.000000e+00> : vector<2x2xf32>
    %330 = tpu.matmul %328, %329, %cst_106 {dimension_numbers = #tpu.dot_dimension_numbers<[1], [0], [0], [1], [0, 0, 1, 1], [], []>} : vector<2x64xf32>, vector<64x2xf32>, vector<2x2xf32> -> vector<2x2xf32>
    %c0_107 = arith.constant 0 : index
    %c0_108 = arith.constant 0 : index
    %331 = vector.load %arg11[%c0_107, %c0_108] : memref<1x2xf32, #tpu.memory_space<vmem>>, vector<1x2xf32>
    %332 = vector.broadcast %331 : vector<1x2xf32> to vector<2x2xf32>
    %333 = arith.addf %330, %332 : vector<2x2xf32>
    %c0_109 = arith.constant 0 : index
    %c0_110 = arith.constant 0 : index
    %334 = vector.load %arg18[%c0_109, %c0_110] : memref<2x2xf32, #tpu.memory_space<vmem>>, vector<2x2xf32>
    tpu.vector_store %arg18[%c0_109, %c0_110], %333 {strides = array<i32>} : memref<2x2xf32, #tpu.memory_space<vmem>>, vector<2x2xf32>,
    return
  }
}

</mosaic_0001>

<bundles_post_ra>
// kernel: bilstm_attention_forward.1
= control target key start
LH: loop header
LB: loop body
LE: loop exit
PB: predicated region body
PF: predicated region fallthrough
CT: control target
= control target key end

     0   :  { %s5091_s0 = inlined_call_operand.vmem [shape: f32[16,64], index: 0, kind: input, shape index: {}]   ;;  %s5092_s1 = inlined_call_operand.vmem [shape: f32[16,64], index: 1, kind: input, shape index: {}]   ;;  %s5093_s2 = inlined_call_operand.vmem [shape: f32[64,256], index: 2, kind: input, shape index: {}]   ;;  %s5094_s3 = inlined_call_operand.vmem [shape: f32[1,256], index: 3, kind: input, shape index: {}]   ;;  %s5095_s4 = inlined_call_operand.vmem [shape: f32[64,256], index: 4, kind: input, shape index: {}]   ;;  %s5096_s5 = inlined_call_operand.vmem [shape: f32[64,1], index: 5, kind: input, shape index: {}]   ;;  %s5097_s6 = inlined_call_operand.vmem [shape: f32[64,192], index: 6, kind: input, shape index: {}]   ;;  %s5098_s7 = inlined_call_operand.vmem [shape: f32[1,192], index: 7, kind: input, shape index: {}]   ;;  %s5099_s8 = inlined_call_operand.vmem [shape: f32[64,64], index: 8, kind: input, shape index: {}]   ;;  %s5100_s9 = inlined_call_operand.vmem [shape: f32[1,64], index: 9, kind: input, shape index: {}]   ;;  %s5101_s10 = inlined_call_operand.vmem [shape: f32[64,2], index: 10, kind: input, shape index: {}]   ;;  %s5102_s11 = inlined_call_operand.hbm [shape: f32[1,2], index: 11, kind: input, shape index: {}]   ;;  %s5103_s12 = inlined_call_operand.vmem [shape: f32[128,16], index: 12, kind: input, shape index: {}]   ;;  %s5104_s13 = inlined_call_operand.vmem [shape: f32[16,128], index: 13, kind: input, shape index: {}]   ;;  %s5105_s14 = inlined_call_operand.vmem [shape: f32[128,64], index: 14, kind: input, shape index: {}]   ;;  %s5106_s15 = inlined_call_operand.vmem [shape: f32[128,128], index: 15, kind: input, shape index: {}]   ;;  %s5107_s16 = inlined_call_operand.vmem [shape: f32[16,16], index: 16, kind: input, shape index: {}]   ;;  %s5108_s17 = inlined_call_operand.vmem [shape: f32[2,16], index: 17, kind: input, shape index: {}]   ;;  %s5109_s18 = inlined_call_operand.hbm [shape: f32[2,2], index: 18, kind: output, shape index: {}]  }
   0x1   :  { %5113 = sst [smem:[#allocation9_spill]] %s5091_s0 }
   0x2   :  { %5114 = sst [smem:[#allocation10_spill]] %s5092_s1 }
   0x3   :  { %5115 = sst [smem:[#allocation11_spill]] %s5093_s2 }
   0x4   :  { %23 = vsyncpa [#allocation4], 0 }
   0x5   :  { %24 = vsyncpa [#allocation5], 0  ;;  %s3877_s27 = smov [#allocation3]  }
   0x6   :  { %s53_s28 = sshll.u32 %s3877_s27, 4  ;;  %s54_s28 = int_to_ptr.vmem [resolvable:$true] %s53_s28 }
   0x7   :  { %s3841_s29 = scalar_lea.vmem %s54_s28, 16  ;;  %s3845_s30 = scalar_lea.vmem %s54_s28, 32 }
   0x8   :  { %p3842_p0 = scmp.ne.s32.totalorder %s54_s28, %s3841_s29  ;;  %p3846_p1 = scmp.lt.s32.totalorder %s54_s28, %s54_s28 }
   0x9   :  { %p3847_p2 = scmp.lt.s32.totalorder %s3845_s30, %s3841_s29 }
   0xb   :  { %p3848_p3 = por %p3847_p2, %p3846_p1 }
   0xd   :  { %p3849_p4 = pnand %p3848_p3, %p3842_p0 }
   0xf   :  { %3852 = shalt.err (!%p3849_p4)
}
  0x10   :  { %56 = dma.hbm_to_vmem [thread:$0]  %s5102_s11, 16, %s54_s28, [#allocation4]  }
  0x11   :  { %3873 = dma.done.wait [#allocation4], 16  }
  0x12   :  { %3874 = vsyncadd [#allocation4], 4294967280  ;;  %v3878_v0 = vmov 0.0   ;;  %s5116_s21 = sld [smem:[#allocation11_spill]]  ;;  %v3989_v2 = vld [vmem:[%s5095_s4 + $0x78] sm:$0xff]  ;;  %v3998_v4 = vld [vmem:[%s5095_s4 + $0x70] sm:$0xff]  ;;  %v92_v34 = vlaneseq }
  0x13   :  { %173 = vmatprep.mubr.f32.mxu0 %v3878_v0  ;;  %271 = vmatprep.mubr.f32.mxu1 %v3878_v0  ;;  %v4006_v6 = vld [vmem:[%s5095_s4 + $0x68] sm:$0xff]  ;;  %v4015_v8 = vld [vmem:[%s5095_s4 + $0x60] sm:$0xff]  ;;  %v4024_v10 = vld [vmem:[%s5095_s4 + $0x58] sm:$0xff]  ;;  %s5117_s11 = sld [smem:[#allocation9_spill]]  ;;  %vm102_vm0 = vcmask 523264   ;;  %s3879_s25 = smov 64  }
  0x14   :  { %223 = vmatprep.subr.mxu1 %v3989_v2  ;;  %v4032_v12 = vld [vmem:[%s5095_s4 + $0x50] sm:$0xff]  ;;  %v4041_v14 = vld [vmem:[%s5095_s4 + $0x48] sm:$0xff]  ;;  %v4050_v16 = vld [vmem:[%s5095_s4 + $0x40] sm:$0xff]  ;;  %v4168_v35 = vshrl.u32 %v92_v34, 7  ;;  %s5118_s29 = sld [smem:[#allocation10_spill]]  ;;  %vm320_vm1 = vcmask 254976  }
  0x15   :  { %224 = vmatpush1.msra.mxu1 %v3998_v4  ;;  %v4059_v18 = vld [vmem:[%s5095_s4 + $0x38] sm:$0xff]  ;;  %v4068_v20 = vld [vmem:[%s5095_s4 + $0x30] sm:$0xff]  ;;  %v4077_v22 = vld [vmem:[%s5095_s4 + $0x28] sm:$0xff]  ;;  %vm322_vm2 = vcmask 517376   ;;  %vm454_vm3 = vcmask 257026   ;;  %vm456_vm4 = vcmask 519426  }
  0x16   :  { %225 = vmatprep.subr.mxu1 %v4006_v6  ;;  %v4086_v24 = vld [vmem:[%s5095_s4 + $0x20] sm:$0xff]  ;;  %v4095_v26 = vld [vmem:[%s5095_s4 + $0x18] sm:$0xff]  ;;  %v4104_v28 = vld [vmem:[%s5095_s4 + $0x10] sm:$0xff]  ;;  %v98_v36 = vsub.s32 1, %v4168_v35  ;;  %v94_v46 = vsub.s32 0, %v4168_v35  ;;  %vm589_vm5 = vcmask 259076  }
  0x17   :  { %226 = vmatpush1.msra.mxu1 %v4015_v8  ;;  %v4113_v30 = vld [vmem:[%s5095_s4 + $0x8] sm:$0xff]  ;;  %v4122_v32 = vld [vmem:[%s5095_s4] sm:$0xff]  ;;  %vm591_vm6 = vcmask 521476   ;;  %vm724_vm7 = vcmask 261126   ;;  %vm726_vm8 = vcmask 523526   ;;  %vm1352_vm9 = vcmask 130048  }
  0x18   :  { %v89_v1 = vld [vmem:[%s5116_s21 + $0x78] sm:$0xff]  ;;  %v88_v3 = vld [vmem:[%s5116_s21 + $0x70] sm:$0xff]  ;;  %v87_v5 = vld [vmem:[%s5116_s21 + $0x68] sm:$0xff]  ;;  %227 = vmatprep.subr.mxu1 %v4024_v10  ;;  %vm1334_vm10 = vcmask 7168   ;;  %vm3881_vm11 = vmmov 0   ;;  %vm3045_vm12 = vcmask 9216  }
  0x19   :  { %125 = vmatprep.subr.mxu0 %v89_v1  ;;  %v86_v7 = vld [vmem:[%s5116_s21 + $0x60] sm:$0xff]  ;;  %v85_v9 = vld [vmem:[%s5116_s21 + $0x58] sm:$0xff]  ;;  %v84_v11 = vld [vmem:[%s5116_s21 + $0x50] sm:$0xff]  ;;  %228 = vmatpush1.msra.mxu1 %v4032_v12 }
  0x1a   :  { %126 = vmatpush1.msra.mxu0 %v88_v3  ;;  %v83_v13 = vld [vmem:[%s5116_s21 + $0x48] sm:$0xff]  ;;  %v82_v15 = vld [vmem:[%s5116_s21 + $0x40] sm:$0xff]  ;;  %v81_v17 = vld [vmem:[%s5116_s21 + $0x38] sm:$0xff]  ;;  %229 = vmatprep.subr.mxu1 %v4041_v14 }
  0x1b   :  { %127 = vmatprep.subr.mxu0 %v87_v5  ;;  %v80_v19 = vld [vmem:[%s5116_s21 + $0x30] sm:$0xff]  ;;  %230 = vmatpush1.msra.mxu1 %v4050_v16  ;;  %v79_v21 = vld [vmem:[%s5116_s21 + $0x28] sm:$0xff]  ;;  %v78_v23 = vld [vmem:[%s5116_s21 + $0x20] sm:$0xff] }
  0x1c   :  { %128 = vmatpush1.msra.mxu0 %v86_v7  ;;  %231 = vmatprep.subr.mxu1 %v4059_v18  ;;  %v77_v25 = vld [vmem:[%s5116_s21 + $0x18] sm:$0xff]  ;;  %v76_v27 = vld [vmem:[%s5116_s21 + $0x10] sm:$0xff]  ;;  %v75_v29 = vld [vmem:[%s5116_s21 + $0x8] sm:$0xff] }
  0x1d   :  { %129 = vmatprep.subr.mxu0 %v85_v9  ;;  %232 = vmatpush1.msra.mxu1 %v4068_v20  ;;  %v74_v31 = vld [vmem:[%s5116_s21] sm:$0xff]  ;;  %v73_v59 = vld [vmem:[%s5117_s11 + $0x8] sm:$0xff]  ;;  %v1563_v35 = vld [vmem:[%s5103_s12 + $0x10] sm:$0xff] }
  0x1e   :  { %130 = vmatpush1.msra.mxu0 %v84_v11  ;;  %233 = vmatprep.subr.mxu1 %v4077_v22  ;;  %v72_v33 = vld [vmem:[%s5117_s11] sm:$0xff] }
  0x1f   :  { %131 = vmatprep.subr.mxu0 %v83_v13  ;;  %234 = vmatpush1.msra.mxu1 %v4086_v24  ;;  %v90_v37 = vld [vmem:[%s5094_s3] sm:$0x3] }
  0x20   :  { %132 = vmatpush1.msra.mxu0 %v82_v15  ;;  %235 = vmatprep.subr.mxu1 %v4095_v26  ;;  %v4176_v38 = vrot.slane %v90_v37, %v98_v36  ;;  %v4186_v47 = vrot.slane %v90_v37, %v94_v46  ;;  %v4203_v1 = vld [vmem:[%s5118_s29] sm:$0xff] }
  0x21   :  { %133 = vmatprep.subr.mxu0 %v81_v17  ;;  %236 = vmatpush1.msra.mxu1 %v4104_v28  ;;  %v4206_v3 = vsub.f32 1.0, %v4203_v1 }
  0x22   :  { %134 = vmatpush1.msra.mxu0 %v80_v19  ;;  %237 = vmatprep.subr.mxu1 %v4113_v30 }
  0x23   :  { %135 = vmatprep.subr.mxu0 %v79_v21  ;;  %238 = vmatpush1.msra.mxu1 %v4122_v32  ;;  %v312_v11 = vmul.f32 0.0, %v4206_v3 }
  0x24   :  { %136 = vmatpush1.msra.mxu0 %v78_v23  ;;  %272 = vmatmul.mubr.f32.vlgmr.msra.gmra.mxu1 %v3878_v0 }
  0x25   :  { %137 = vmatprep.subr.mxu0 %v77_v25  ;;  %478 = vmatprep.subr.mxu1 %v3989_v2 }
  0x26   :  { %138 = vmatpush1.msra.mxu0 %v76_v27  ;;  %479 = vmatpush1.msra.mxu1 %v3998_v4 }
  0x27   :  { %139 = vmatprep.subr.mxu0 %v75_v29  ;;  %480 = vmatprep.subr.mxu1 %v4006_v6 }
  0x28   :  { %140 = vmatpush1.msra.mxu0 %v74_v31  ;;  %481 = vmatpush1.msra.mxu1 %v4015_v8 }
  0x29   :  { %3062 = vmatmul.mubr.msk.f32.vlgmr.msra.gmra.mxu0 %vm102_vm0, %v72_v33  ;;  %343 = vmatprep.subr.mxu0 %v3989_v2 }
  0x2a   :  { %179 = vmatprep.mubr.f32.mxu0 %v3878_v0  ;;  %344 = vmatpush1.msra.mxu0 %v3998_v4 }
  0x2b   :  { %345 = vmatprep.subr.mxu0 %v4006_v6  ;;  %482 = vmatprep.subr.mxu1 %v4024_v10 }
  0x2c   :  { %346 = vmatpush1.msra.mxu0 %v4015_v8  ;;  %483 = vmatpush1.msra.mxu1 %v4032_v12 }
  0x2d   :  { %347 = vmatprep.subr.mxu0 %v4024_v10  ;;  %484 = vmatprep.subr.mxu1 %v4041_v14 }
  0x2e   :  { %348 = vmatpush1.msra.mxu0 %v4032_v12  ;;  %485 = vmatpush1.msra.mxu1 %v4050_v16 }
  0x2f   :  { %349 = vmatprep.subr.mxu0 %v4041_v14  ;;  %486 = vmatprep.subr.mxu1 %v4059_v18 }
  0x30   :  { %350 = vmatpush1.msra.mxu0 %v4050_v16  ;;  %487 = vmatpush1.msra.mxu1 %v4068_v20 }
  0x31   :  { %351 = vmatprep.subr.mxu0 %v4059_v18  ;;  %488 = vmatprep.subr.mxu1 %v4077_v22 }
  0x32   :  { %352 = vmatpush1.msra.mxu0 %v4068_v20  ;;  %489 = vmatpush1.msra.mxu1 %v4086_v24 }
  0x33   :  { %353 = vmatprep.subr.mxu0 %v4077_v22  ;;  %490 = vmatprep.subr.mxu1 %v4095_v26 }
  0x34   :  { %354 = vmatpush1.msra.mxu0 %v4086_v24  ;;  %491 = vmatpush1.msra.mxu1 %v4104_v28 }
  0x35   :  { %355 = vmatprep.subr.mxu0 %v4095_v26  ;;  %492 = vmatprep.subr.mxu1 %v4113_v30 }
  0x36   :  { %356 = vmatpush1.msra.mxu0 %v4104_v28  ;;  %493 = vmatpush1.msra.mxu1 %v4122_v32 }
  0x37   :  { %357 = vmatprep.subr.mxu0 %v4113_v30  ;;  %526 = vmatprep.mubr.f32.mxu1 %v3878_v0 }
  0x38   :  { %358 = vmatpush1.msra.mxu0 %v4122_v32  ;;  %748 = vmatprep.subr.mxu1 %v3989_v2 }
  0x39   :  { %613 = vmatprep.subr.mxu0 %v3989_v2  ;;  %3063 = vmatmul.mubr.msk.f32.gmra.mxu0 %vm102_vm0, %v73_v59 }
  0x3a   :  { %391 = vmatprep.mubr.f32.mxu0 %v3878_v0 }
  0xe4   :  { %v273_v40 = vpop.f32.mrf.mxu1 }
  0xe6   :  { %v275_v43 = vpop.f32.mrf.mxu1 }
  0xe9   :  { %v175_v39 = vpop.f32.mrf.mxu0 }
  0xea   :  { %v4189_v48 = vadd.f32 %v175_v39, %v4186_v47 }
  0xeb   :  { %v177_v41 = vpop.f32.mrf.mxu0 }
  0xec   :  { %v4179_v42 = vadd.f32 %v177_v41, %v4176_v38  ;;  %v278_v49 = vadd.f32 %v273_v40, %v4189_v48 }
  0xee   :  { %v279_v44 = vadd.f32 %v275_v43, %v4179_v42  ;;  %v3064_v50 = vmul.f32 -1.442695, %v278_v49 }
  0xf0   :  { %3661 = vtanh.f32 %v279_v44  ;;  %v3065_v61 = vmul.f32 -1.442695, %v279_v44 }
  0xf1   :  { %3663 = vpow2.f32 %v3064_v50 }
  0xf9   :  { %v4235_v25 = vpop.f32.mrf.mxu0 }
  0xfb   :  { %v4237_v27 = vpop.f32.mrf.mxu0 }
  0xfd   :  { %v3662_v45 = vpop.eup %3661 }
  0xfe   :  { %295 = vrot.lane.b32.xlu0 %v3662_v45, %s3879_s25  ;;  %v3664_v51 = vpop.eup %3663 }
  0xff   :  { %v286_v52 = vadd.f32 1.0, %v3664_v51 }
 0x101   :  { %3665 = vrcp.f32 %v286_v52 }
 0x10e   :  { %v3666_v53 = vpop.eup %3665 }
 0x10f   :  { %v293_v56 = vmul.f32 0.0, %v3666_v53 }
 0x170   :  { %v296_v54 = vpop.permute.xlu0 %295 }
 0x171   :  { %v298_v55 = vmul.f32 %v3666_v53, %v296_v54 }
 0x173   :  { %300 = vrot.lane.b32.xlu0 %v298_v55, %s3879_s25 }
 0x1e5   :  { %v301_v57 = vpop.permute.xlu0 %300 }
 0x1e6   :  { %v303_v58 = vadd.f32 %v301_v57, %v293_v56 }
 0x1e8   :  { %3667 = vtanh.f32 %v303_v58 }
 0x1e9   :  { %3669 = vpow2.f32 %v3065_v61 }
 0x1f5   :  { %v3668_v60 = vpop.eup %3667 }
 0x1f6   :  { %306 = vrot.lane.b32.xlu1 %v3668_v60, %s3879_s25  ;;  %v3670_v62 = vpop.eup %3669 }
 0x1f7   :  { %v287_v63 = vadd.f32 1.0, %v3670_v62 }
 0x1f9   :  { %3671 = vrcp.f32 %v287_v63 }
 0x1fa   :  { %315 = vrot.lane.b32.xlu1 %v303_v58, %s3879_s25 }
 0x206   :  { %v3672_v5 = vpop.eup %3671 }
 0x268   :  { %v307_v7 = vpop.permute.xlu1 %306 }
 0x269   :  { %v309_v9 = vmul.f32 %v3672_v5, %v307_v7 }
 0x26b   :  { %v310_v13 = vmul.f32 %v309_v9, %v4203_v1 }
 0x26c   :  { %v316_v15 = vpop.permute.xlu1 %315 }
 0x26d   :  { %321 = vst.msk [vmem:[#allocation2] sm:$0x3] %vm320_vm1, %v310_v13  ;;  %v4212_v17 = vadd.f32 %v312_v11, %v310_v13  ;;  %v318_v19 = vmul.f32 %v316_v15, %v4203_v1 }
 0x26e   :  { %323 = vst.msk [vmem:[#allocation2 + $0xe] sm:$0x3] %vm322_vm2, %v310_v13 }
 0x26f   :  { %v319_v21 = vadd.f32 %v318_v19, %v312_v11  ;;  %3066 = vmatmul.mubr.msk.f32.vlgmr.msra.gmra.mxu0 %vm102_vm0, %v4212_v17  ;;  %v442_v5 = vrot.slane %v4212_v17, 6 }
 0x270   :  { %614 = vmatpush1.msra.mxu0 %v3998_v4  ;;  %661 = vmatprep.mubr.f32.mxu0 %v3878_v0 }
 0x271   :  { %v420_v23 = vrot.slane %v319_v21, 6  ;;  %615 = vmatprep.subr.mxu0 %v4006_v6  ;;  %v444_v13 = vmul.f32 %v442_v5, %v4206_v3 }
 0x272   :  { %616 = vmatpush1.msra.mxu0 %v4015_v8 }
 0x273   :  { %421 = vrot.lane.b32.xlu1 %v420_v23, %s3879_s25  ;;  %617 = vmatprep.subr.mxu0 %v4024_v10  ;;  %v452_v61 = vmul.f32 %v420_v23, %v4206_v3 }
 0x274   :  { %618 = vmatpush1.msra.mxu0 %v4032_v12 }
 0x275   :  { %619 = vmatprep.subr.mxu0 %v4041_v14 }
 0x276   :  { %620 = vmatpush1.msra.mxu0 %v4050_v16 }
 0x277   :  { %621 = vmatprep.subr.mxu0 %v4059_v18 }
 0x278   :  { %622 = vmatpush1.msra.mxu0 %v4068_v20 }
 0x279   :  { %623 = vmatprep.subr.mxu0 %v4077_v22 }
 0x27a   :  { %624 = vmatpush1.msra.mxu0 %v4086_v24 }
 0x27b   :  { %625 = vmatprep.subr.mxu0 %v4095_v26 }
 0x27c   :  { %626 = vmatpush1.msra.mxu0 %v4104_v28 }
 0x27d   :  { %627 = vmatprep.subr.mxu0 %v4113_v30 }
 0x27e   :  { %628 = vmatpush1.msra.mxu0 %v4122_v32 }
 0x27f   :  { %874 = vmatprep.subr.mxu0 %v3989_v2 }
 0x2e5   :  { %v422_v51 = vpop.permute.xlu1 %421 }
 0x32f   :  { %v393_v29 = vpop.f32.mrf.mxu0 }
 0x330   :  { %v400_v39 = vrot.slane %v393_v29, 6 }
 0x331   :  { %v395_v31 = vpop.f32.mrf.mxu0 }
 0x332   :  { %v401_v33 = vrot.slane %v395_v31, 6  ;;  %v404_v40 = vadd.f32 %v400_v39, %v4189_v48 }
 0x334   :  { %v405_v34 = vadd.f32 %v401_v33, %v4179_v42  ;;  %v3067_v41 = vmul.f32 -1.442695, %v404_v40 }
 0x336   :  { %3673 = vtanh.f32 %v405_v34  ;;  %v3068_v56 = vmul.f32 -1.442695, %v405_v34 }
 0x337   :  { %3675 = vpow2.f32 %v3067_v41 }
 0x343   :  { %v3674_v37 = vpop.eup %3673 }
 0x344   :  { %426 = vrot.lane.b32.xlu0 %v3674_v37, %s3879_s25  ;;  %v3676_v43 = vpop.eup %3675 }
 0x345   :  { %v412_v44 = vadd.f32 1.0, %v3676_v43 }
 0x347   :  { %3677 = vrcp.f32 %v412_v44 }
 0x354   :  { %v3678_v45 = vpop.eup %3677 }
 0x355   :  { %v424_v52 = vmul.f32 %v3678_v45, %v422_v51 }
 0x3b6   :  { %v427_v49 = vpop.permute.xlu0 %426 }
 0x3b7   :  { %v429_v50 = vmul.f32 %v3678_v45, %v427_v49 }
 0x3b9   :  { %431 = vrot.lane.b32.xlu0 %v429_v50, %s3879_s25 }
 0x42b   :  { %v432_v53 = vpop.permute.xlu0 %431 }
 0x42c   :  { %v434_v54 = vadd.f32 %v432_v53, %v424_v52 }
 0x42e   :  { %3679 = vtanh.f32 %v434_v54  ;;  %447 = vrot.lane.b32.xlu0 %v434_v54, %s3879_s25 }
 0x42f   :  { %3681 = vpow2.f32 %v3068_v56 }
 0x43b   :  { %v3680_v55 = vpop.eup %3679 }
 0x43c   :  { %437 = vrot.lane.b32.xlu1 %v3680_v55, %s3879_s25  ;;  %v3682_v57 = vpop.eup %3681 }
 0x43d   :  { %v413_v58 = vadd.f32 1.0, %v3682_v57 }
 0x43f   :  { %3683 = vrcp.f32 %v413_v58 }
 0x44c   :  { %v3684_v7 = vpop.eup %3683 }
 0x4a0   :  { %v448_v59 = vpop.permute.xlu0 %447 }
 0x4a1   :  { %v450_v60 = vmul.f32 %v448_v59, %v4203_v1 }
 0x4a3   :  { %v4247_v62 = vadd.f32 %v452_v61, %v450_v60 }
 0x4a5   :  { %v555_v63 = vrot.slane %v4247_v62, 6 }
 0x4a7   :  { %556 = vrot.lane.b32.xlu0 %v555_v63, %s3879_s25  ;;  %v587_v59 = vmul.f32 %v555_v63, %v4206_v3 }
 0x4ae   :  { %v438_v9 = vpop.permute.xlu1 %437 }
 0x4af   :  { %v440_v11 = vmul.f32 %v3684_v7, %v438_v9 }
 0x4b1   :  { %v441_v15 = vmul.f32 %v440_v11, %v4203_v1 }
 0x4b3   :  { %v4256_v19 = vadd.f32 %v444_v13, %v441_v15  ;;  %455 = vst.msk [vmem:[#allocation2] sm:$0xc] %vm454_vm3, %v441_v15 }
 0x4b4   :  { %457 = vst.msk [vmem:[#allocation2 + $0xa] sm:$0xc] %vm456_vm4, %v441_v15 }
 0x4b5   :  { %v459_v21 = vrot.slane %v4256_v19, 2  ;;  %v577_v5 = vrot.slane %v4256_v19, 6 }
 0x4b7   :  { %3069 = vmatmul.mubr.msk.f32.vlgmr.msra.gmra.mxu1 %vm102_vm0, %v459_v21  ;;  %v579_v13 = vmul.f32 %v577_v5, %v4206_v3 }
 0x4b8   :  { %749 = vmatpush1.msra.mxu1 %v3998_v4  ;;  %796 = vmatprep.mubr.f32.mxu1 %v3878_v0 }
 0x4b9   :  { %750 = vmatprep.subr.mxu1 %v4006_v6 }
 0x4ba   :  { %751 = vmatpush1.msra.mxu1 %v4015_v8 }
 0x4bb   :  { %752 = vmatprep.subr.mxu1 %v4024_v10 }
 0x4bc   :  { %753 = vmatpush1.msra.mxu1 %v4032_v12 }
 0x4bd   :  { %754 = vmatprep.subr.mxu1 %v4041_v14 }
 0x4be   :  { %755 = vmatpush1.msra.mxu1 %v4050_v16 }
 0x4bf   :  { %756 = vmatprep.subr.mxu1 %v4059_v18 }
 0x4c0   :  { %757 = vmatpush1.msra.mxu1 %v4068_v20 }
 0x4c1   :  { %758 = vmatprep.subr.mxu1 %v4077_v22 }
 0x4c2   :  { %759 = vmatpush1.msra.mxu1 %v4086_v24 }
 0x4c3   :  { %760 = vmatprep.subr.mxu1 %v4095_v26 }
 0x4c4   :  { %761 = vmatpush1.msra.mxu1 %v4104_v28 }
 0x4c5   :  { %762 = vmatprep.subr.mxu1 %v4113_v30 }
 0x4c6   :  { %763 = vmatpush1.msra.mxu1 %v4122_v32 }
 0x4c7   :  { %1007 = vmatprep.subr.mxu1 %v3989_v2 }
 0x519   :  { %v557_v49 = vpop.permute.xlu0 %556 }
 0x577   :  { %v528_v17 = vpop.f32.mrf.mxu1 }
 0x578   :  { %v535_v34 = vrot.slane %v528_v17, 4 }
 0x579   :  { %v530_v23 = vpop.f32.mrf.mxu1 }
 0x57a   :  { %v536_v29 = vrot.slane %v530_v23, 4  ;;  %v539_v37 = vadd.f32 %v535_v34, %v4189_v48 }
 0x57c   :  { %v540_v31 = vadd.f32 %v536_v29, %v4179_v42  ;;  %v3070_v39 = vmul.f32 -1.442695, %v539_v37 }
 0x57e   :  { %3685 = vtanh.f32 %v540_v31  ;;  %v3071_v54 = vmul.f32 -1.442695, %v540_v31 }
 0x57f   :  { %3687 = vpow2.f32 %v3070_v39 }
 0x58b   :  { %v3686_v33 = vpop.eup %3685 }
 0x58c   :  { %561 = vrot.lane.b32.xlu1 %v3686_v33, %s3879_s25  ;;  %v3688_v40 = vpop.eup %3687 }
 0x58d   :  { %v547_v41 = vadd.f32 1.0, %v3688_v40 }
 0x58f   :  { %3689 = vrcp.f32 %v547_v41 }
 0x59c   :  { %v3690_v43 = vpop.eup %3689 }
 0x59d   :  { %v559_v50 = vmul.f32 %v3690_v43, %v557_v49 }
 0x5fe   :  { %v562_v44 = vpop.permute.xlu1 %561 }
 0x5ff   :  { %v564_v45 = vmul.f32 %v3690_v43, %v562_v44 }
 0x601   :  { %566 = vrot.lane.b32.xlu1 %v564_v45, %s3879_s25 }
 0x673   :  { %v567_v51 = vpop.permute.xlu1 %566 }
 0x674   :  { %v569_v52 = vadd.f32 %v567_v51, %v559_v50 }
 0x676   :  { %3691 = vtanh.f32 %v569_v52  ;;  %582 = vrot.lane.b32.xlu1 %v569_v52, %s3879_s25 }
 0x677   :  { %3693 = vpow2.f32 %v3071_v54 }
 0x683   :  { %v3692_v53 = vpop.eup %3691 }
 0x684   :  { %572 = vrot.lane.b32.xlu0 %v3692_v53, %s3879_s25  ;;  %v3694_v55 = vpop.eup %3693 }
 0x685   :  { %v548_v56 = vadd.f32 1.0, %v3694_v55 }
 0x687   :  { %3695 = vrcp.f32 %v548_v56 }
 0x694   :  { %v3696_v7 = vpop.eup %3695 }
 0x6e8   :  { %v583_v57 = vpop.permute.xlu1 %582 }
 0x6e9   :  { %v585_v58 = vmul.f32 %v583_v57, %v4203_v1 }
 0x6eb   :  { %v4289_v60 = vadd.f32 %v587_v59, %v585_v58 }
 0x6ed   :  { %v690_v61 = vrot.slane %v4289_v60, 6 }
 0x6ef   :  { %691 = vrot.lane.b32.xlu1 %v690_v61, %s3879_s25  ;;  %v722_v54 = vmul.f32 %v690_v61, %v4206_v3 }
 0x6f6   :  { %v573_v9 = vpop.permute.xlu0 %572 }
 0x6f7   :  { %v575_v11 = vmul.f32 %v3696_v7, %v573_v9 }
 0x6f9   :  { %v576_v62 = vmul.f32 %v575_v11, %v4203_v1 }
 0x6fb   :  { %v4298_v63 = vadd.f32 %v579_v13, %v576_v62  ;;  %590 = vst.msk [vmem:[#allocation2] sm:$0x30] %vm589_vm5, %v576_v62 }
 0x6fc   :  { %592 = vst.msk [vmem:[#allocation2 + $0x6] sm:$0x30] %vm591_vm6, %v576_v62 }
 0x6fd   :  { %v594_v15 = vrot.slane %v4298_v63, 4  ;;  %v712_v57 = vrot.slane %v4298_v63, 6  ;;  %v4370_v63 = vadd.f32 %v4235_v25, %v4186_v47 }
 0x6ff   :  { %3072 = vmatmul.mubr.msk.f32.vlgmr.msra.gmra.mxu0 %vm102_vm0, %v594_v15  ;;  %v714_v7 = vmul.f32 %v712_v57, %v4206_v3  ;;  %v4364_v3 = vadd.f32 %v4237_v27, %v4176_v38 }
 0x700   :  { %875 = vmatpush1.msra.mxu0 %v3998_v4  ;;  %922 = vmatprep.mubr.f32.mxu0 %v3878_v0 }
 0x701   :  { %876 = vmatprep.subr.mxu0 %v4006_v6 }
 0x702   :  { %877 = vmatpush1.msra.mxu0 %v4015_v8 }
 0x703   :  { %878 = vmatprep.subr.mxu0 %v4024_v10 }
 0x704   :  { %879 = vmatpush1.msra.mxu0 %v4032_v12 }
 0x705   :  { %880 = vmatprep.subr.mxu0 %v4041_v14 }
 0x706   :  { %881 = vmatpush1.msra.mxu0 %v4050_v16 }
 0x707   :  { %882 = vmatprep.subr.mxu0 %v4059_v18 }
 0x708   :  { %883 = vmatpush1.msra.mxu0 %v4068_v20 }
 0x709   :  { %884 = vmatprep.subr.mxu0 %v4077_v22 }
 0x70a   :  { %885 = vmatpush1.msra.mxu0 %v4086_v24 }
 0x70b   :  { %886 = vmatprep.subr.mxu0 %v4095_v26 }
 0x70c   :  { %887 = vmatpush1.msra.mxu0 %v4104_v28 }
 0x70d   :  { %888 = vmatprep.subr.mxu0 %v4113_v30 }
 0x70e   :  { %889 = vmatpush1.msra.mxu0 %v4122_v32 }
 0x70f   :  { %1140 = vmatprep.subr.mxu0 %v3989_v2 }
 0x761   :  { %v692_v43 = vpop.permute.xlu1 %691 }
 0x7bf   :  { %v663_v19 = vpop.f32.mrf.mxu0 }
 0x7c0   :  { %v670_v31 = vrot.slane %v663_v19, 2 }
 0x7c1   :  { %v665_v21 = vpop.f32.mrf.mxu0 }
 0x7c2   :  { %v671_v17 = vrot.slane %v665_v21, 2  ;;  %v674_v33 = vadd.f32 %v670_v31, %v4189_v48 }
 0x7c4   :  { %v675_v23 = vadd.f32 %v671_v17, %v4179_v42  ;;  %v3073_v34 = vmul.f32 -1.442695, %v674_v33 }
 0x7c6   :  { %3697 = vtanh.f32 %v675_v23  ;;  %v3074_v48 = vmul.f32 -1.442695, %v675_v23 }
 0x7c7   :  { %3699 = vpow2.f32 %v3073_v34 }
 0x7d3   :  { %v3698_v29 = vpop.eup %3697 }
 0x7d4   :  { %696 = vrot.lane.b32.xlu0 %v3698_v29, %s3879_s25  ;;  %v3700_v37 = vpop.eup %3699 }
 0x7d5   :  { %v682_v39 = vadd.f32 1.0, %v3700_v37 }
 0x7d7   :  { %3701 = vrcp.f32 %v682_v39  ;;  %v4379_v39 = vld [vmem:[%s5118_s29 + $0x8] sm:$0xff] }
 0x7e4   :  { %v3702_v40 = vpop.eup %3701 }
 0x7e5   :  { %v694_v44 = vmul.f32 %v3702_v40, %v692_v43 }
 0x846   :  { %v697_v41 = vpop.permute.xlu0 %696 }
 0x847   :  { %v699_v2 = vmul.f32 %v3702_v40, %v697_v41  ;;  %v4382_v41 = vsub.f32 1.0, %v4379_v39 }
 0x849   :  { %701 = vrot.lane.b32.xlu0 %v699_v2, %s3879_s25 }
 0x8bb   :  { %v702_v42 = vpop.permute.xlu0 %701 }
 0x8bc   :  { %v704_v45 = vadd.f32 %v702_v42, %v694_v44 }
 0x8be   :  { %3703 = vtanh.f32 %v704_v45  ;;  %717 = vrot.lane.b32.xlu0 %v704_v45, %s3879_s25 }
 0x8bf   :  { %3705 = vpow2.f32 %v3074_v48 }
 0x8cb   :  { %v3704_v49 = vpop.eup %3703 }
 0x8cc   :  { %707 = vrot.lane.b32.xlu1 %v3704_v49, %s3879_s25  ;;  %v3706_v50 = vpop.eup %3705 }
 0x8cd   :  { %v683_v51 = vadd.f32 1.0, %v3706_v50 }
 0x8cf   :  { %3707 = vrcp.f32 %v683_v51 }
 0x8dc   :  { %v3708_v58 = vpop.eup %3707 }
 0x930   :  { %v718_v52 = vpop.permute.xlu0 %717 }
 0x931   :  { %v720_v53 = vmul.f32 %v718_v52, %v4203_v1 }
 0x933   :  { %v4331_v55 = vadd.f32 %v722_v54, %v720_v53 }
 0x935   :  { %v819_v56 = vrot.slane %v4331_v55, 6 }
 0x937   :  { %820 = vrot.lane.b32.xlu0 %v819_v56, %s3879_s25  ;;  %v851_v44 = vmul.f32 %v4382_v41, %v819_v56 }
 0x93e   :  { %v708_v59 = vpop.permute.xlu1 %707 }
 0x93f   :  { %v710_v5 = vmul.f32 %v3708_v58, %v708_v59 }
 0x941   :  { %v711_v60 = vmul.f32 %v710_v5, %v4203_v1 }
 0x943   :  { %v4340_v61 = vadd.f32 %v714_v7, %v711_v60  ;;  %725 = vst.msk [vmem:[#allocation2] sm:$0xc0] %vm724_vm7, %v711_v60 }
 0x944   :  { %727 = vst.msk [vmem:[#allocation2 + $0x2] sm:$0xc0] %vm726_vm8, %v711_v60 }
 0x945   :  { %v729_v9 = vrot.slane %v4340_v61, 6 }
 0x947   :  { %3075 = vmatmul.mubr.msk.f32.vlgmr.msra.gmra.mxu1 %vm102_vm0, %v729_v9  ;;  %v843_v51 = vmul.f32 %v4382_v41, %v729_v9 }
 0x948   :  { %1008 = vmatpush1.msra.mxu1 %v3998_v4  ;;  %1055 = vmatprep.mubr.f32.mxu1 %v3878_v0 }
 0x949   :  { %1009 = vmatprep.subr.mxu1 %v4006_v6 }
 0x94a   :  { %1010 = vmatpush1.msra.mxu1 %v4015_v8 }
 0x94b   :  { %1011 = vmatprep.subr.mxu1 %v4024_v10 }
 0x94c   :  { %1012 = vmatpush1.msra.mxu1 %v4032_v12 }
 0x94d   :  { %1013 = vmatprep.subr.mxu1 %v4041_v14 }
 0x94e   :  { %1014 = vmatpush1.msra.mxu1 %v4050_v16 }
 0x94f   :  { %1015 = vmatprep.subr.mxu1 %v4059_v18 }
 0x950   :  { %1016 = vmatpush1.msra.mxu1 %v4068_v20 }
 0x951   :  { %1017 = vmatprep.subr.mxu1 %v4077_v22 }
 0x952   :  { %1018 = vmatpush1.msra.mxu1 %v4086_v24 }
 0x953   :  { %1019 = vmatprep.subr.mxu1 %v4095_v26 }
 0x954   :  { %1020 = vmatpush1.msra.mxu1 %v4104_v28 }
 0x955   :  { %1021 = vmatprep.subr.mxu1 %v4113_v30 }
 0x956   :  { %1022 = vmatpush1.msra.mxu1 %v4122_v32 }
 0x9a9   :  { %v821_v29 = vpop.permute.xlu0 %820 }
 0xa07   :  { %v798_v1 = vpop.f32.mrf.mxu1 }
 0xa08   :  { %v803_v15 = vadd.f32 %v798_v1, %v4370_v63 }
 0xa09   :  { %v800_v11 = vpop.f32.mrf.mxu1 }
 0xa0a   :  { %v804_v13 = vadd.f32 %v800_v11, %v4364_v3  ;;  %v3076_v19 = vmul.f32 -1.442695, %v803_v15 }
 0xa0c   :  { %3709 = vtanh.f32 %v804_v13  ;;  %v3077_v25 = vmul.f32 -1.442695, %v804_v13 }
 0xa0d   :  { %3711 = vpow2.f32 %v3076_v19 }
 0xa19   :  { %v3710_v62 = vpop.eup %3709 }
 0xa1a   :  { %825 = vrot.lane.b32.xlu1 %v3710_v62, %s3879_s25  ;;  %v3712_v21 = vpop.eup %3711 }
 0xa1b   :  { %v811_v17 = vadd.f32 1.0, %v3712_v21 }
 0xa1d   :  { %3713 = vrcp.f32 %v811_v17 }
 0xa2a   :  { %v3714_v38 = vpop.eup %3713 }
 0xa2b   :  { %v823_v31 = vmul.f32 %v3714_v38, %v821_v29 }
 0xa8c   :  { %v826_v27 = vpop.permute.xlu1 %825 }
 0xa8d   :  { %v828_v23 = vmul.f32 %v3714_v38, %v826_v27 }
 0xa8f   :  { %830 = vrot.lane.b32.xlu1 %v828_v23, %s3879_s25 }
 0xb01   :  { %v831_v33 = vpop.permute.xlu1 %830 }
 0xb02   :  { %v833_v34 = vadd.f32 %v831_v33, %v823_v31 }
 0xb04   :  { %3715 = vtanh.f32 %v833_v34  ;;  %846 = vrot.lane.b32.xlu1 %v833_v34, %s3879_s25 }
 0xb05   :  { %3717 = vpow2.f32 %v3077_v25 }
 0xb11   :  { %v3716_v47 = vpop.eup %3715 }
 0xb12   :  { %836 = vrot.lane.b32.xlu0 %v3716_v47, %s3879_s25  ;;  %v3718_v37 = vpop.eup %3717 }
 0xb13   :  { %v812_v40 = vadd.f32 1.0, %v3718_v37 }
 0xb15   :  { %3719 = vrcp.f32 %v812_v40 }
 0xb22   :  { %v3720_v49 = vpop.eup %3719 }
 0xb76   :  { %v847_v2 = vpop.permute.xlu1 %846 }
 0xb77   :  { %v849_v43 = vmul.f32 %v847_v2, %v4379_v39 }
 0xb79   :  { %v852_v42 = vadd.f32 %v851_v44, %v849_v43 }
 0xb7b   :  { %v951_v45 = vrot.slane %v852_v42, 6 }
 0xb7d   :  { %952 = vrot.lane.b32.xlu1 %v951_v45, %s3879_s25  ;;  %v983_v60 = vmul.f32 %v951_v45, %v4382_v41 }
 0xb84   :  { %v837_v48 = vpop.permute.xlu0 %836 }
 0xb85   :  { %v839_v50 = vmul.f32 %v3720_v49, %v837_v48 }
 0xb87   :  { %v840_v52 = vmul.f32 %v839_v50, %v4379_v39 }
 0xb89   :  { %v844_v53 = vadd.f32 %v843_v51, %v840_v52  ;;  %853 = vst.msk [vmem:[#allocation2 + $0x8] sm:$0x3] %vm320_vm1, %v840_v52 }
 0xb8a   :  { %854 = vst.msk [vmem:[#allocation2 + $0x6] sm:$0x3] %vm322_vm2, %v840_v52 }
 0xb8b   :  { %3078 = vmatmul.mubr.msk.f32.vlgmr.msra.gmra.mxu0 %vm102_vm0, %v844_v53  ;;  %v973_v1 = vrot.slane %v844_v53, 6 }
 0xb8c   :  { %1141 = vmatpush1.msra.mxu0 %v3998_v4  ;;  %1188 = vmatprep.mubr.f32.mxu0 %v3878_v0 }
 0xb8d   :  { %1142 = vmatprep.subr.mxu0 %v4006_v6  ;;  %v975_v15 = vmul.f32 %v973_v1, %v4382_v41 }
 0xb8e   :  { %1143 = vmatpush1.msra.mxu0 %v4015_v8 }
 0xb8f   :  { %1144 = vmatprep.subr.mxu0 %v4024_v10 }
 0xb90   :  { %1145 = vmatpush1.msra.mxu0 %v4032_v12 }
 0xb91   :  { %1146 = vmatprep.subr.mxu0 %v4041_v14 }
 0xb92   :  { %1147 = vmatpush1.msra.mxu0 %v4050_v16 }
 0xb93   :  { %1148 = vmatprep.subr.mxu0 %v4059_v18 }
 0xb94   :  { %1149 = vmatpush1.msra.mxu0 %v4068_v20 }
 0xb95   :  { %1150 = vmatprep.subr.mxu0 %v4077_v22 }
 0xb96   :  { %1151 = vmatpush1.msra.mxu0 %v4086_v24 }
 0xb97   :  { %1152 = vmatprep.subr.mxu0 %v4095_v26 }
 0xb98   :  { %1153 = vmatpush1.msra.mxu0 %v4104_v28 }
 0xb99   :  { %1154 = vmatprep.subr.mxu0 %v4113_v30 }
 0xb9a   :  { %1155 = vmatpush1.msra.mxu0 %v4122_v32 }
 0xbef   :  { %v953_v30 = vpop.permute.xlu1 %952 }
 0xc4b   :  { %v924_v4 = vpop.f32.mrf.mxu0 }
 0xc4c   :  { %v931_v14 = vrot.slane %v924_v4, 6 }
 0xc4d   :  { %v926_v6 = vpop.f32.mrf.mxu0 }
 0xc4e   :  { %v932_v8 = vrot.slane %v926_v6, 6  ;;  %v935_v16 = vadd.f32 %v931_v14, %v4370_v63 }
 0xc50   :  { %v936_v10 = vadd.f32 %v932_v8, %v4364_v3  ;;  %v3079_v18 = vmul.f32 -1.442695, %v935_v16 }
 0xc52   :  { %3721 = vtanh.f32 %v936_v10  ;;  %v3080_v57 = vmul.f32 -1.442695, %v936_v10 }
 0xc53   :  { %3723 = vpow2.f32 %v3079_v18 }
 0xc5f   :  { %v3722_v12 = vpop.eup %3721 }
 0xc60   :  { %957 = vrot.lane.b32.xlu0 %v3722_v12, %s3879_s25  ;;  %v3724_v20 = vpop.eup %3723 }
 0xc61   :  { %v943_v22 = vadd.f32 1.0, %v3724_v20 }
 0xc63   :  { %3725 = vrcp.f32 %v943_v22 }
 0xc70   :  { %v3726_v24 = vpop.eup %3725 }
 0xc71   :  { %v955_v32 = vmul.f32 %v3726_v24, %v953_v30 }
 0xcd2   :  { %v958_v26 = vpop.permute.xlu0 %957 }
 0xcd3   :  { %v960_v28 = vmul.f32 %v3726_v24, %v958_v26 }
 0xcd5   :  { %962 = vrot.lane.b32.xlu0 %v960_v28, %s3879_s25 }
 0xd47   :  { %v963_v54 = vpop.permute.xlu0 %962 }
 0xd48   :  { %v965_v55 = vadd.f32 %v963_v54, %v955_v32 }
 0xd4a   :  { %3727 = vtanh.f32 %v965_v55  ;;  %978 = vrot.lane.b32.xlu0 %v965_v55, %s3879_s25 }
 0xd4b   :  { %3729 = vpow2.f32 %v3080_v57 }
 0xd57   :  { %v3728_v56 = vpop.eup %3727 }
 0xd58   :  { %968 = vrot.lane.b32.xlu1 %v3728_v56, %s3879_s25  ;;  %v3730_v58 = vpop.eup %3729 }
 0xd59   :  { %v944_v59 = vadd.f32 1.0, %v3730_v58 }
 0xd5b   :  { %3731 = vrcp.f32 %v944_v59 }
 0xd68   :  { %v3732_v11 = vpop.eup %3731 }
 0xdbc   :  { %v979_v5 = vpop.permute.xlu0 %978 }
 0xdbd   :  { %v981_v7 = vmul.f32 %v979_v5, %v4379_v39 }
 0xdbf   :  { %v984_v61 = vadd.f32 %v983_v60, %v981_v7 }
 0xdc1   :  { %v1084_v9 = vrot.slane %v984_v61, 6 }
 0xdc3   :  { %1085 = vrot.lane.b32.xlu0 %v1084_v9, %s3879_s25  ;;  %v1116_v6 = vmul.f32 %v1084_v9, %v4382_v41 }
 0xdca   :  { %v969_v13 = vpop.permute.xlu1 %968 }
 0xdcb   :  { %v971_v62 = vmul.f32 %v3732_v11, %v969_v13  ;;  %v1252_v11 = vld [vmem:[%s5096_s5 + $0x38] sm:$0xff]  ;;  %v1251_v13 = vld [vmem:[%s5096_s5 + $0x30] sm:$0xff] }
 0xdcc   :  { %3351 = vmatprep.subr.mxu1 %v1252_v11 }
 0xdcd   :  { %v972_v19 = vmul.f32 %v971_v62, %v4379_v39  ;;  %v1250_v62 = vld [vmem:[%s5096_s5 + $0x28] sm:$0xff] }
 0xdcf   :  { %v976_v21 = vadd.f32 %v975_v15, %v972_v19  ;;  %985 = vst.msk [vmem:[#allocation2 + $0x8] sm:$0xc] %vm454_vm3, %v972_v19  ;;  %v1249_v15 = vld [vmem:[%s5096_s5 + $0x20] sm:$0xff] }
 0xdd0   :  { %986 = vst.msk [vmem:[#allocation2 + $0x2] sm:$0xc] %vm456_vm4, %v972_v19  ;;  %v1248_v19 = vld [vmem:[%s5096_s5 + $0x18] sm:$0xff] }
 0xdd1   :  { %v988_v17 = vrot.slane %v976_v21, 2  ;;  %v1106_v12 = vrot.slane %v976_v21, 6  ;;  %v1247_v21 = vld [vmem:[%s5096_s5 + $0x10] sm:$0xff] }
 0xdd3   :  { %3081 = vmatmul.mubr.msk.f32.vlgmr.msra.gmra.mxu1 %vm102_vm0, %v988_v17  ;;  %v1108_v20 = vmul.f32 %v1106_v12, %v4382_v41  ;;  %v1246_v17 = vld [vmem:[%s5096_s5 + $0x8] sm:$0xff] }
 0xdd4   :  { %3352 = vmatpush3.msra.mxu1 %v1252_v11 }
 0xdd5   :  { %3353 = vmatprep.subr.mxu1 %v1251_v13 }
 0xdd6   :  { %3354 = vmatpush3.msra.mxu1 %v1251_v13 }
 0xdd7   :  { %3355 = vmatprep.subr.mxu1 %v1250_v62 }
 0xdd8   :  { %3356 = vmatpush3.msra.mxu1 %v1250_v62 }
 0xdd9   :  { %3357 = vmatprep.subr.mxu1 %v1249_v15 }
 0xdda   :  { %3358 = vmatpush3.msra.mxu1 %v1249_v15 }
 0xddb   :  { %3359 = vmatprep.subr.mxu1 %v1248_v19 }
 0xddc   :  { %3360 = vmatpush3.msra.mxu1 %v1248_v19 }
 0xddd   :  { %3361 = vmatprep.subr.mxu1 %v1247_v21 }
 0xdde   :  { %3362 = vmatpush3.msra.mxu1 %v1247_v21  ;;  %v1561_v21 = vld [vmem:[%s5103_s12] sm:$0xff] }
 0xddf   :  { %3363 = vmatprep.subr.mxu1 %v1246_v17 }
 0xde0   :  { %3364 = vmatpush3.msra.mxu1 %v1246_v17  ;;  %v1466_v17 = vld [vmem:[%s5098_s7] sm:$0x3] }
 0xe35   :  { %v1086_v44 = vpop.permute.xlu0 %1085 }
 0xe93   :  { %v1057_v38 = vpop.f32.mrf.mxu1 }
 0xe94   :  { %v1064_v33 = vrot.slane %v1057_v38, 4  ;;  %v1245_v38 = vld [vmem:[%s5096_s5] sm:$0xff] }
 0xe95   :  { %v1059_v27 = vpop.f32.mrf.mxu1  ;;  %3365 = vmatprep.subr.mxu1 %v1245_v38 }
 0xe96   :  { %v1065_v23 = vrot.slane %v1059_v27, 4  ;;  %v1068_v34 = vadd.f32 %v1064_v33, %v4370_v63  ;;  %3366 = vmatpush3.msra.mxu1 %v1245_v38  ;;  %v1471_v38 = vrot.slane %v1466_v17, %v94_v46 }
 0xe98   :  { %v1069_v29 = vadd.f32 %v1065_v23, %v4364_v3  ;;  %v3082_v47 = vmul.f32 -1.442695, %v1068_v34 }
 0xe9a   :  { %3733 = vtanh.f32 %v1069_v29  ;;  %v3083_v50 = vmul.f32 -1.442695, %v1069_v29 }
 0xe9b   :  { %3735 = vpow2.f32 %v3082_v47 }
 0xea7   :  { %v3734_v31 = vpop.eup %3733 }
 0xea8   :  { %1090 = vrot.lane.b32.xlu1 %v3734_v31, %s3879_s25  ;;  %v3736_v25 = vpop.eup %3735 }
 0xea9   :  { %v1076_v37 = vadd.f32 1.0, %v3736_v25 }
 0xeab   :  { %3737 = vrcp.f32 %v1076_v37 }
 0xeb8   :  { %v3738_v40 = vpop.eup %3737 }
 0xeb9   :  { %v1088_v42 = vmul.f32 %v3738_v40, %v1086_v44 }
 0xf1a   :  { %v1091_v2 = vpop.permute.xlu1 %1090 }
 0xf1b   :  { %v1093_v43 = vmul.f32 %v3738_v40, %v1091_v2 }
 0xf1d   :  { %1095 = vrot.lane.b32.xlu1 %v1093_v43, %s3879_s25 }
 0xf8f   :  { %v1096_v45 = vpop.permute.xlu1 %1095 }
 0xf90   :  { %v1098_v49 = vadd.f32 %v1096_v45, %v1088_v42 }
 0xf92   :  { %3739 = vtanh.f32 %v1098_v49  ;;  %1111 = vrot.lane.b32.xlu1 %v1098_v49, %s3879_s25 }
 0xf93   :  { %3741 = vpow2.f32 %v3083_v50 }
 0xf9f   :  { %v3740_v48 = vpop.eup %3739 }
 0xfa0   :  { %1101 = vrot.lane.b32.xlu0 %v3740_v48, %s3879_s25  ;;  %v3742_v51 = vpop.eup %3741 }
 0xfa1   :  { %v1077_v52 = vadd.f32 1.0, %v3742_v51 }
 0xfa3   :  { %3743 = vrcp.f32 %v1077_v52 }
 0xfb0   :  { %v3744_v14 = vpop.eup %3743 }
0x1004   :  { %v1112_v53 = vpop.permute.xlu1 %1111 }
0x1005   :  { %v1114_v4 = vmul.f32 %v1112_v53, %v4379_v39 }
0x1007   :  { %v1117_v8 = vadd.f32 %v1116_v6, %v1114_v4 }
0x1009   :  { %v1217_v10 = vrot.slane %v1117_v8, 6 }
0x100b   :  { %1218 = vrot.lane.b32.xlu1 %v1217_v10, %s3879_s25 }
0x1012   :  { %v1102_v16 = vpop.permute.xlu0 %1101 }
0x1013   :  { %v1104_v18 = vmul.f32 %v3744_v14, %v1102_v16 }
0x1015   :  { %v1105_v22 = vmul.f32 %v1104_v18, %v4379_v39  ;;  %v1351_v18 = vld [vmem:[%s5107_s16 + $0x8] sm:$0xff] }
0x1017   :  { %v1109_v24 = vadd.f32 %v1108_v20, %v1105_v22  ;;  %1118 = vst.msk [vmem:[#allocation2 + $0x8] sm:$0x30] %vm589_vm5, %v1105_v22  ;;  %v3880_v20 = vmov 0  }
0x1018   :  { %1119 = vst.msk [vmem:[#allocation2 - $0x2] sm:$0x30] %vm591_vm6, %v1105_v22  ;;  %3660 = vset.pattern.permute.xlu1 %v3880_v20  ;;  %3659 = vset.pattern.permute.xlu0 %v3880_v20  ;;  %v1465_v22 = vld [vmem:[%s5097_s6 + $0x78] sm:$0xff] }
0x1019   :  { %v1121_v26 = vrot.slane %v1109_v24, 4  ;;  %v1464_v24 = vld [vmem:[%s5097_s6 + $0x70] sm:$0xff]  ;;  %1500 = vmatprep.subr.mxu1 %v1465_v22 }
0x101b   :  { %3084 = vmatmul.mubr.msk.f32.vlgmr.msra.gmra.mxu0 %vm102_vm0, %v1121_v26  ;;  %v1463_v26 = vld [vmem:[%s5097_s6 + $0x68] sm:$0xff] }
0x107d   :  { %v1219_v61 = vpop.permute.xlu1 %1218 }
0x10db   :  { %v1190_v28 = vpop.f32.mrf.mxu0 }
0x10dc   :  { %v1197_v41 = vrot.slane %v1190_v28, 2  ;;  %v1462_v28 = vld [vmem:[%s5097_s6 + $0x60] sm:$0xff] }
0x10dd   :  { %v1192_v30 = vpop.f32.mrf.mxu0 }
0x10de   :  { %v1198_v32 = vrot.slane %v1192_v30, 2  ;;  %v1201_v56 = vadd.f32 %v1197_v41, %v4370_v63  ;;  %v1461_v30 = vld [vmem:[%s5097_s6 + $0x58] sm:$0xff] }
0x10df   :  { %v1457_v41 = vld [vmem:[%s5097_s6 + $0x38] sm:$0xff] }
0x10e0   :  { %v1202_v54 = vadd.f32 %v1198_v32, %v4364_v3  ;;  %v3085_v57 = vmul.f32 -1.442695, %v1201_v56  ;;  %v1460_v32 = vld [vmem:[%s5097_s6 + $0x50] sm:$0xff] }
0x10e1   :  { %v1456_v56 = vld [vmem:[%s5097_s6 + $0x30] sm:$0xff] }
0x10e2   :  { %3745 = vtanh.f32 %v1202_v54  ;;  %v3086_v27 = vmul.f32 -1.442695, %v1202_v54  ;;  %v1459_v54 = vld [vmem:[%s5097_s6 + $0x48] sm:$0xff] }
0x10e3   :  { %3747 = vpow2.f32 %v3085_v57  ;;  %v1455_v57 = vld [vmem:[%s5097_s6 + $0x28] sm:$0xff] }
0x10ef   :  { %v3746_v55 = vpop.eup %3745 }
0x10f0   :  { %1223 = vrot.lane.b32.xlu0 %v3746_v55, %s3879_s25  ;;  %v3748_v58 = vpop.eup %3747  ;;  %v1458_v55 = vld [vmem:[%s5097_s6 + $0x40] sm:$0xff] }
0x10f1   :  { %v1209_v59 = vadd.f32 1.0, %v3748_v58  ;;  %v1454_v58 = vld [vmem:[%s5097_s6 + $0x20] sm:$0xff] }
0x10f3   :  { %3749 = vrcp.f32 %v1209_v59 }
0x1100   :  { %v3750_v5 = vpop.eup %3749 }
0x1101   :  { %v1221_v9 = vmul.f32 %v3750_v5, %v1219_v61 }
0x1162   :  { %v1224_v7 = vpop.permute.xlu0 %1223 }
0x1163   :  { %v1226_v60 = vmul.f32 %v3750_v5, %v1224_v7  ;;  %v1453_v7 = vld [vmem:[%s5097_s6 + $0x18] sm:$0xff] }
0x1165   :  { %1228 = vrot.lane.b32.xlu0 %v1226_v60, %s3879_s25  ;;  %v1452_v60 = vld [vmem:[%s5097_s6 + $0x10] sm:$0xff] }
0x11d7   :  { %v1229_v3 = vpop.permute.xlu0 %1228 }
0x11d8   :  { %v1231_v1 = vadd.f32 %v1229_v3, %v1221_v9  ;;  %v1451_v9 = vld [vmem:[%s5097_s6 + $0x8] sm:$0xff] }
0x11da   :  { %3751 = vtanh.f32 %v1231_v1  ;;  %v1450_v1 = vld [vmem:[%s5097_s6] sm:$0xff] }
0x11db   :  { %3753 = vpow2.f32 %v3086_v27 }
0x11e7   :  { %v3752_v63 = vpop.eup %3751 }
0x11e8   :  { %1234 = vrot.lane.b32.xlu1 %v3752_v63, %s3879_s25  ;;  %v3754_v23 = vpop.eup %3753 }
0x11e9   :  { %v1210_v29 = vadd.f32 1.0, %v3754_v23 }
0x11eb   :  { %3755 = vrcp.f32 %v1210_v29 }
0x11f8   :  { %v3756_v31 = vpop.eup %3755 }
0x125a   :  { %v1235_v33 = vpop.permute.xlu1 %1234 }
0x125b   :  { %v1237_v34 = vmul.f32 %v3756_v31, %v1235_v33 }
0x125d   :  { %v1238_v47 = vmul.f32 %v1237_v34, %v4379_v39  ;;  %v1350_v39 = vld [vmem:[%s5107_s16] sm:$0xff] }
0x125e   :  { %3374 = vmatprep.mubr.msk.f32.mxu0 %vm1352_vm9, %v1350_v39  ;;  %v1567_v39 = vld [vmem:[%s5103_s12 + $0x30] sm:$0xff] }
0x125f   :  { %1239 = vst.msk [vmem:[#allocation2 + $0x8] sm:$0xc0] %vm724_vm7, %v1238_v47 }
0x1260   :  { %1240 = vst.msk [vmem:[#allocation2 - $0x6] sm:$0xc0] %vm726_vm8, %v1238_v47  ;;  %v1475_v47 = vrot.slane %v1466_v17, %v98_v36  ;;  %v1564_v36 = vld [vmem:[%s5103_s12 + $0x18] sm:$0xff] }
0x1266   :  { %v4472_v37 = vld [vmem:[#allocation2 + $0x8] sm:$0xff] }
0x1267   :  { %v4470_v25 = vld [vmem:[#allocation2] sm:$0xff] }
0x1268   :  { %3757 = vtanh.f32 %v4470_v25 }
0x1269   :  { %3759 = vtanh.f32 %v4472_v37 }
0x1275   :  { %v3758_v40 = vpop.eup %3757 }
0x1276   :  { %v3760_v2 = vpop.eup %3759  ;;  %3367 = vmatprep.mubr.msk.f32.mxu1 %vm102_vm0, %v3758_v40  ;;  %v1565_v40 = vld [vmem:[%s5103_s12 + $0x20] sm:$0xff] }
0x1277   :  { %3368 = vmatmul.mubr.msk.f32.vlgmr.msra.gmra.mxu1 %vm102_vm0, %v3760_v2  ;;  %v1566_v2 = vld [vmem:[%s5103_s12 + $0x28] sm:$0xff] }
0x1278   :  { %1548 = vmatprep.mubr.f32.mxu1 %v3878_v0  ;;  %1501 = vmatpush1.msra.mxu1 %v1464_v24 }
0x1279   :  { %1502 = vmatprep.subr.mxu1 %v1463_v26 }
0x127a   :  { %1503 = vmatpush1.msra.mxu1 %v1462_v28 }
0x127b   :  { %1504 = vmatprep.subr.mxu1 %v1461_v30 }
0x127c   :  { %1505 = vmatpush1.msra.mxu1 %v1460_v32 }
0x127d   :  { %1506 = vmatprep.subr.mxu1 %v1459_v54 }
0x127e   :  { %1507 = vmatpush1.msra.mxu1 %v1458_v55 }
0x127f   :  { %1508 = vmatprep.subr.mxu1 %v1457_v41 }
0x1280   :  { %1509 = vmatpush1.msra.mxu1 %v1456_v56 }
0x1281   :  { %1510 = vmatprep.subr.mxu1 %v1455_v57  ;;  %v4665_v57 = vld [vmem:[%s5105_s14 + $0x78] sm:$0xff] }
0x1282   :  { %1511 = vmatpush1.msra.mxu1 %v1454_v58 }
0x1283   :  { %1512 = vmatprep.subr.mxu1 %v1453_v7 }
0x1284   :  { %1513 = vmatpush1.msra.mxu1 %v1452_v60 }
0x1285   :  { %1514 = vmatprep.subr.mxu1 %v1451_v9 }
0x1286   :  { %1515 = vmatpush1.msra.mxu1 %v1450_v1 }
0x1337   :  { %v3369_v43 = vpop.f32.mrf.mxu1 }
0x1338   :  { %v1336_v42 = vsel %vm1334_vm10, %v3369_v43, -inf }
0x1339   :  { %v1325_v44 = vpop.f32.mrf.mxu1 }
0x133a   :  { %v1335_v45 = vsel %vm1334_vm10, %v1325_v44, -inf }
0x133b   :  { %v1337_v49 = vmax.f32 %v1335_v45, %v1336_v42  ;;  %v1570_v42 = vld [vmem:[%s5103_s12 + $0x48] sm:$0xff]  ;;  %v1571_v45 = vld [vmem:[%s5103_s12 + $0x50] sm:$0xff] }
0x133d   :  { %v1338_v48 = vrot.slane %v1337_v49, 4 }
0x133f   :  { %v1339_v50 = vmax.f32 %v1337_v49, %v1338_v48  ;;  %v1572_v49 = vld [vmem:[%s5103_s12 + $0x58] sm:$0xff]  ;;  %v1573_v48 = vld [vmem:[%s5103_s12 + $0x60] sm:$0xff] }
0x1341   :  { %v1340_v51 = vrot.slane %v1339_v50, 2 }
0x1343   :  { %v1341_v52 = vmax.f32 %v1339_v50, %v1340_v51  ;;  %v1574_v50 = vld [vmem:[%s5103_s12 + $0x68] sm:$0xff]  ;;  %v1575_v51 = vld [vmem:[%s5103_s12 + $0x70] sm:$0xff] }
0x1345   :  { %v1342_v53 = vrot.slane %v1341_v52, 1 }
0x1347   :  { %v1343_v4 = vmax.f32 %v1341_v52, %v1342_v53  ;;  %v1576_v52 = vld [vmem:[%s5103_s12 + $0x78] sm:$0xff] }
0x1349   :  { %v1344_v6 = vsub.f32 %v1325_v44, %v1343_v4  ;;  %v1345_v8 = vsub.f32 %v3369_v43, %v1343_v4  ;;  %v1568_v43 = vld [vmem:[%s5103_s12 + $0x38] sm:$0xff]  ;;  %v1569_v44 = vld [vmem:[%s5103_s12 + $0x40] sm:$0xff] }
0x134b   :  { %v1348_v10 = vmul.f32 1.442695, %v1345_v8  ;;  %v1346_v12 = vmul.f32 1.442695, %v1344_v6  ;;  %v4650_v8 = vld [vmem:[%s5105_s14] sm:$0xff] }
0x134d   :  { %3761 = vpow2.f32 %v1348_v10 }
0x134e   :  { %3763 = vpow2.f32 %v1346_v12 }
0x135a   :  { %v3762_v14 = vpop.eup %3761 }
0x135b   :  { %3370 = vmatprep.subr.mxu0 %v3762_v14  ;;  %v3764_v16 = vpop.eup %3763 }
0x135c   :  { %3371 = vmatpush3.msra.mxu0 %v3762_v14 }
0x135d   :  { %3372 = vmatprep.subr.mxu0 %v3764_v16 }
0x135e   :  { %3373 = vmatpush3.msra.mxu0 %v3764_v16 }
0x135f   :  { %3375 = vmatmul.mubr.msk.f32.vlgmr.msra.gmra.mxu0 %vm1352_vm9, %v1351_v18 }
0x1360   :  { %3381 = vmatprep.mubr.msk.f32.mxu0 %vm1352_vm9, %v1561_v21 }
0x141f   :  { %v3376_v59 = vpop.f32.mrf.mxu0 }
0x1420   :  { %3765 = vrcp.f32 %v3376_v59  ;;  %v4670_v59 = vld [vmem:[%s5105_s14 + $0x70] sm:$0xff] }
0x1421   :  { %v1425_v5 = vpop.f32.mrf.mxu0 }
0x1422   :  { %3767 = vrcp.f32 %v1425_v5 }
0x142d   :  { %v3766_v61 = vpop.eup %3765 }
0x142e   :  { %v1437_v3 = vmul.f32 %v3766_v61, %v3762_v14  ;;  %v4678_v61 = vld [vmem:[%s5105_s14 + $0x68] sm:$0xff] }
0x142f   :  { %v3768_v11 = vpop.eup %3767 }
0x1430   :  { %1445 = vperm.xlu1 %3660, %v1437_v3   ;;  %v1436_v63 = vmul.f32 %v3768_v11, %v3764_v16  ;;  %v4686_v3 = vld [vmem:[%s5105_s14 + $0x60] sm:$0xff]  ;;  %v4694_v11 = vld [vmem:[%s5105_s14 + $0x58] sm:$0xff] }
0x1432   :  { %1440 = vperm.xlu0 %3659, %v1436_v63  }
0x14ab   :  { %v1446_v15 = vpop.permute.xlu1 %1445 }
0x14ac   :  { %v1449_v19 = vmul.f32 %v1446_v15, %v4472_v37  ;;  %v4710_v15 = vld [vmem:[%s5105_s14 + $0x48] sm:$0xff] }
0x14ad   :  { %v1441_v13 = vpop.permute.xlu0 %1440 }
0x14ae   :  { %v1448_v62 = vmul.f32 %v1441_v13, %v4470_v25  ;;  %v1562_v25 = vld [vmem:[%s5103_s12 + $0x8] sm:$0xff]  ;;  %v4702_v13 = vld [vmem:[%s5105_s14 + $0x50] sm:$0xff] }
0x14b0   :  { %3091 = vmatmul.mubr.msk.f32.vlgmr.msra.gmra.mxu1 %vm102_vm0, %v1448_v62 }
0x14b1   :  { %1554 = vmatprep.mubr.f32.mxu1 %v3878_v0 }
0x14b4   :  { %3092 = vmatmul.mubr.msk.f32.gmra.mxu1 %vm102_vm0, %v1449_v19 }
0x14b5   :  { %3409 = vmatprep.mubr.msk.f32.mxu1 %vm1352_vm9, %v1561_v21 }
0x1570   :  { %v1550_v27 = vpop.f32.mrf.mxu1 }
0x1571   :  { %v1551_v23 = vadd.f32 %v1550_v27, %v1471_v38 }
0x1572   :  { %v1552_v29 = vpop.f32.mrf.mxu1 }
0x1573   :  { %1804 = vrot.lane.b32.xlu0 %v1551_v23, %s3879_s25  ;;  %v1553_v37 = vadd.f32 %v1552_v29, %v1475_v47 }
0x1574   :  { %v1556_v31 = vpop.f32.mrf.mxu1 }
0x1575   :  { %v1557_v33 = vadd.f32 %v1556_v31, %v1471_v38  ;;  %v4726_v38 = vld [vmem:[%s5105_s14 + $0x38] sm:$0xff] }
0x1576   :  { %v1558_v34 = vpop.f32.mrf.mxu1 }
0x1577   :  { %1806 = vrot.lane.b32.xlu1 %v1557_v33, %s3879_s25  ;;  %3377 = vmatprep.subr.mxu0 %v1557_v33  ;;  %v1559_v46 = vadd.f32 %v1558_v34, %v1475_v47 }
0x1578   :  { %3378 = vmatpush3.msra.mxu0 %v1557_v33  ;;  %v4742_v33 = vld [vmem:[%s5105_s14 + $0x28] sm:$0xff] }
0x1579   :  { %3379 = vmatprep.subr.mxu0 %v1551_v23 }
0x157a   :  { %3380 = vmatpush3.msra.mxu0 %v1551_v23  ;;  %v4734_v23 = vld [vmem:[%s5105_s14 + $0x30] sm:$0xff] }
0x157b   :  { %3433 = vmatprep.subr.mxu0 %v1559_v46  ;;  %3382 = vmatmul.mubr.msk.f32.vlgmr.msra.gmra.mxu0 %vm1352_vm9, %v1562_v25 }
0x157c   :  { %3434 = vmatpush3.msra.mxu0 %v1559_v46  ;;  %3384 = vmatprep.mubr.msk.f32.mxu0 %vm1352_vm9, %v1563_v35 }
0x157d   :  { %3435 = vmatprep.subr.mxu0 %v1553_v37 }
0x157e   :  { %3436 = vmatpush3.msra.mxu0 %v1553_v37 }
0x157f   :  { %3385 = vmatmul.mubr.msk.f32.gmra.mxu0 %vm1352_vm9, %v1564_v36 }
0x1580   :  { %3387 = vmatprep.mubr.msk.f32.mxu0 %vm1352_vm9, %v1565_v40 }
0x1583   :  { %3388 = vmatmul.mubr.msk.f32.gmra.mxu0 %vm1352_vm9, %v1566_v2 }
0x1584   :  { %3390 = vmatprep.mubr.msk.f32.mxu0 %vm1352_vm9, %v1567_v39 }
0x1587   :  { %3391 = vmatmul.mubr.msk.f32.gmra.mxu0 %vm1352_vm9, %v1568_v43 }
0x1588   :  { %3393 = vmatprep.mubr.msk.f32.mxu0 %vm1352_vm9, %v1569_v44 }
0x158b   :  { %3394 = vmatmul.mubr.msk.f32.gmra.mxu0 %vm1352_vm9, %v1570_v42 }
0x158c   :  { %3396 = vmatprep.mubr.msk.f32.mxu0 %vm1352_vm9, %v1571_v45 }
0x158f   :  { %3397 = vmatmul.mubr.msk.f32.gmra.mxu0 %vm1352_vm9, %v1572_v49 }
0x1590   :  { %3399 = vmatprep.mubr.msk.f32.mxu0 %vm1352_vm9, %v1573_v48 }
0x1593   :  { %3400 = vmatmul.mubr.msk.f32.gmra.mxu0 %vm1352_vm9, %v1574_v50 }
0x1594   :  { %3402 = vmatprep.mubr.msk.f32.mxu0 %vm1352_vm9, %v1575_v51 }
0x1597   :  { %3403 = vmatmul.mubr.msk.f32.gmra.mxu0 %vm1352_vm9, %v1576_v52 }
0x1598   :  { %3437 = vmatprep.mubr.msk.f32.mxu0 %vm1352_vm9, %v1561_v21  ;;  %v4718_v21 = vld [vmem:[%s5105_s14 + $0x40] sm:$0xff] }
0x159b   :  { %3438 = vmatmul.mubr.msk.f32.vlgmr.msra.gmra.mxu0 %vm1352_vm9, %v1562_v25 }
0x159c   :  { %3440 = vmatprep.mubr.msk.f32.mxu0 %vm1352_vm9, %v1563_v35 }
0x159f   :  { %3441 = vmatmul.mubr.msk.f32.gmra.mxu0 %vm1352_vm9, %v1564_v36 }
0x15a0   :  { %3443 = vmatprep.mubr.msk.f32.mxu0 %vm1352_vm9, %v1565_v40 }
0x15a3   :  { %3444 = vmatmul.mubr.msk.f32.gmra.mxu0 %vm1352_vm9, %v1566_v2 }
0x15a4   :  { %3446 = vmatprep.mubr.msk.f32.mxu0 %vm1352_vm9, %v1567_v39 }
0x15a7   :  { %3447 = vmatmul.mubr.msk.f32.gmra.mxu0 %vm1352_vm9, %v1568_v43 }
0x15a8   :  { %3449 = vmatprep.mubr.msk.f32.mxu0 %vm1352_vm9, %v1569_v44 }
0x15ab   :  { %3450 = vmatmul.mubr.msk.f32.gmra.mxu0 %vm1352_vm9, %v1570_v42 }
0x15ac   :  { %3452 = vmatprep.mubr.msk.f32.mxu0 %vm1352_vm9, %v1571_v45 }
0x15af   :  { %3453 = vmatmul.mubr.msk.f32.gmra.mxu0 %vm1352_vm9, %v1572_v49 }
0x15b0   :  { %3455 = vmatprep.mubr.msk.f32.mxu0 %vm1352_vm9, %v1573_v48 }
0x15b3   :  { %3456 = vmatmul.mubr.msk.f32.gmra.mxu0 %vm1352_vm9, %v1574_v50 }
0x15b4   :  { %3458 = vmatprep.mubr.msk.f32.mxu0 %vm1352_vm9, %v1575_v51 }
0x15b7   :  { %3459 = vmatmul.mubr.msk.f32.gmra.mxu0 %vm1352_vm9, %v1576_v52 }
0x15e5   :  { %v1805_v4 = vpop.permute.xlu0 %1804 }
0x15e9   :  { %v1807_v53 = vpop.permute.xlu1 %1806 }
0x15ea   :  { %3405 = vmatprep.subr.mxu1 %v1807_v53 }
0x15eb   :  { %3406 = vmatpush3.msra.mxu1 %v1807_v53 }
0x15ec   :  { %3407 = vmatprep.subr.mxu1 %v1805_v4 }
0x15ed   :  { %3408 = vmatpush3.msra.mxu1 %v1805_v4 }
0x15ee   :  { %3410 = vmatmul.mubr.msk.f32.vlgmr.msra.gmra.mxu1 %vm1352_vm9, %v1562_v25  ;;  %v4750_v25 = vld [vmem:[%s5105_s14 + $0x20] sm:$0xff] }
0x15ef   :  { %3412 = vmatprep.mubr.msk.f32.mxu1 %vm1352_vm9, %v1563_v35  ;;  %v4758_v35 = vld [vmem:[%s5105_s14 + $0x18] sm:$0xff] }
0x15f2   :  { %3413 = vmatmul.mubr.msk.f32.gmra.mxu1 %vm1352_vm9, %v1564_v36 }
0x15f3   :  { %3415 = vmatprep.mubr.msk.f32.mxu1 %vm1352_vm9, %v1565_v40 }
0x15f6   :  { %3416 = vmatmul.mubr.msk.f32.gmra.mxu1 %vm1352_vm9, %v1566_v2  ;;  %v4767_v2 = vld [vmem:[%s5105_s14 + $0x10] sm:$0xff] }
0x15f7   :  { %3418 = vmatprep.mubr.msk.f32.mxu1 %vm1352_vm9, %v1567_v39 }
0x15fa   :  { %3419 = vmatmul.mubr.msk.f32.gmra.mxu1 %vm1352_vm9, %v1568_v43 }
0x15fb   :  { %3421 = vmatprep.mubr.msk.f32.mxu1 %vm1352_vm9, %v1569_v44  ;;  %v4776_v44 = vld [vmem:[%s5105_s14 + $0x8] sm:$0xff] }
0x15fe   :  { %3422 = vmatmul.mubr.msk.f32.gmra.mxu1 %vm1352_vm9, %v1570_v42 }
0x15ff   :  { %3424 = vmatprep.mubr.msk.f32.mxu1 %vm1352_vm9, %v1571_v45 }
0x1602   :  { %3425 = vmatmul.mubr.msk.f32.gmra.mxu1 %vm1352_vm9, %v1572_v49 }
0x1603   :  { %3427 = vmatprep.mubr.msk.f32.mxu1 %vm1352_vm9, %v1573_v48 }
0x1606   :  { %3428 = vmatmul.mubr.msk.f32.gmra.mxu1 %vm1352_vm9, %v1574_v50 }
0x1607   :  { %3430 = vmatprep.mubr.msk.f32.mxu1 %vm1352_vm9, %v1575_v51 }
0x160a   :  { %3431 = vmatmul.mubr.msk.f32.gmra.mxu1 %vm1352_vm9, %v1576_v52 }
0x163b   :  { %v4645_v6 = vpop.f32.mrf.mxu0 }
0x163c   :  { %v1787_v52 = vmul.f32 %v4645_v6, %v4776_v44 }
0x163d   :  { %v1707_v10 = vpop.f32.mrf.mxu0 }
0x163e   :  { %v1786_v12 = vmul.f32 %v1707_v10, %v4650_v8 }
0x163f   :  { %v3386_v29 = vpop.f32.mrf.mxu0 }
0x1640   :  { %3493 = vmatprep.mubr.msk.f32.mxu1 %vm102_vm0, %v1786_v12  ;;  %v1789_v10 = vmul.f32 %v3386_v29, %v4758_v35  ;;  %v2392_v29 = vld [vmem:[%s5106_s15 + $0x18] sm:$0xff] }
0x1641   :  { %v1717_v34 = vpop.f32.mrf.mxu0 }
0x1642   :  { %v1788_v51 = vmul.f32 %v1717_v34, %v4767_v2 }
0x1643   :  { %v3389_v46 = vpop.f32.mrf.mxu0 }
0x1645   :  { %v1727_v36 = vpop.f32.mrf.mxu0 }
0x1646   :  { %v1790_v4 = vmul.f32 %v1727_v36, %v4750_v25 }
0x1647   :  { %v3392_v39 = vpop.f32.mrf.mxu0 }
0x1649   :  { %v1737_v42 = vpop.f32.mrf.mxu0 }
0x164b   :  { %v3395_v49 = vpop.f32.mrf.mxu0 }
0x164d   :  { %v1747_v50 = vpop.f32.mrf.mxu0 }
0x164e   :  { %v1794_v6 = vmul.f32 %v1747_v50, %v4718_v21 }
0x164f   :  { %v3398_v53 = vpop.f32.mrf.mxu0 }
0x1651   :  { %v1757_v12 = vpop.f32.mrf.mxu0 }
0x16ae   :  { %v4654_v14 = vpop.f32.mrf.mxu1 }
0x16af   :  { %v1956_v45 = vmul.f32 %v4654_v14, %v4776_v44  ;;  %v1792_v14 = vmul.f32 %v1737_v42, %v4734_v23 }
0x16b0   :  { %v4656_v16 = vpop.f32.mrf.mxu1 }
0x16b1   :  { %v1955_v48 = vmul.f32 %v4656_v16, %v4650_v8  ;;  %v1791_v16 = vmul.f32 %v3389_v46, %v4742_v33 }
0x16b2   :  { %v4658_v18 = vpop.f32.mrf.mxu1 }
0x16b3   :  { %v1958_v40 = vmul.f32 %v4658_v18, %v4758_v35  ;;  %v3401_v18 = vpop.f32.mrf.mxu0 }
0x16b4   :  { %v4660_v20 = vpop.f32.mrf.mxu1 }
0x16b5   :  { %v1957_v43 = vmul.f32 %v4660_v20, %v4767_v2  ;;  %v1793_v20 = vmul.f32 %v3392_v39, %v4726_v38  ;;  %v2394_v39 = vld [vmem:[%s5106_s15 + $0x28] sm:$0xff] }
0x16b6   :  { %v3417_v22 = vpop.f32.mrf.mxu1 }
0x16b7   :  { %v1960_v47 = vmul.f32 %v3417_v22, %v4742_v33  ;;  %v1767_v22 = vpop.f32.mrf.mxu0 }
0x16b8   :  { %v1896_v24 = vpop.f32.mrf.mxu1 }
0x16b9   :  { %v1959_v37 = vmul.f32 %v1896_v24, %v4750_v25  ;;  %v1796_v24 = vmul.f32 %v1757_v12, %v4702_v13 }
0x16ba   :  { %v3420_v26 = vpop.f32.mrf.mxu1 }
0x16bb   :  { %v1962_v27 = vmul.f32 %v3420_v26, %v4726_v38  ;;  %v1795_v26 = vmul.f32 %v3395_v49, %v4710_v15 }
0x16bc   :  { %v1906_v28 = vpop.f32.mrf.mxu1 }
0x16bd   :  { %v1961_v31 = vmul.f32 %v1906_v28, %v4734_v23  ;;  %v3404_v28 = vpop.f32.mrf.mxu0 }
0x16be   :  { %v3423_v30 = vpop.f32.mrf.mxu1 }
0x16bf   :  { %v1964_v19 = vmul.f32 %v3423_v30, %v4710_v15  ;;  %v1798_v30 = vmul.f32 %v1767_v22, %v4686_v3 }
0x16c0   :  { %v1916_v32 = vpop.f32.mrf.mxu1 }
0x16c1   :  { %v1963_v17 = vmul.f32 %v1916_v32, %v4718_v21  ;;  %v1797_v32 = vmul.f32 %v3398_v53, %v4694_v11  ;;  %v2395_v53 = vld [vmem:[%s5106_s15 + $0x30] sm:$0xff] }
0x16c2   :  { %v3426_v54 = vpop.f32.mrf.mxu1 }
0x16c3   :  { %v1966_v63 = vmul.f32 %v3426_v54, %v4694_v11  ;;  %v1777_v54 = vpop.f32.mrf.mxu0 }
0x16c4   :  { %v1926_v55 = vpop.f32.mrf.mxu1 }
0x16c5   :  { %v1965_v62 = vmul.f32 %v1926_v55, %v4702_v13  ;;  %v1800_v55 = vmul.f32 %v1777_v54, %v4670_v59  ;;  %v2400_v54 = vld [vmem:[%s5106_s15 + $0x58] sm:$0xff] }
0x16c6   :  { %v3429_v41 = vpop.f32.mrf.mxu1 }
0x16c7   :  { %v1968_v9 = vmul.f32 %v3429_v41, %v4678_v61  ;;  %v1799_v41 = vmul.f32 %v3401_v18, %v4678_v61 }
0x16c8   :  { %v1936_v56 = vpop.f32.mrf.mxu1 }
0x16c9   :  { %v1967_v1 = vmul.f32 %v1936_v56, %v4686_v3  ;;  %v1801_v56 = vmul.f32 %v3404_v28, %v4665_v57 }
0x16ca   :  { %v3432_v58 = vpop.f32.mrf.mxu1 }
0x16cb   :  { %v1970_v5 = vmul.f32 %v3432_v58, %v4665_v57 }
0x16cc   :  { %v1946_v7 = vpop.f32.mrf.mxu1 }
0x16cd   :  { %3461 = vmatprep.subr.msk.mxu1 %vm102_vm0, %v1970_v5  ;;  %v1969_v60 = vmul.f32 %v1946_v7, %v4670_v59 }
0x16ce   :  { %3462 = vmatpush3.xpose.msk.msra.mxu1 %vm102_vm0, %v1970_v5  ;;  %v2390_v5 = vld [vmem:[%s5106_s15 + $0x8] sm:$0xff] }
0x16cf   :  { %3463 = vmatprep.subr.msk.mxu1 %vm102_vm0, %v1969_v60 }
0x16d2   :  { %3464 = vmatpush3.xpose.msk.msra.mxu1 %vm102_vm0, %v1969_v60 }
0x16d3   :  { %3465 = vmatprep.subr.msk.mxu1 %vm102_vm0, %v1968_v9 }
0x16d6   :  { %3466 = vmatpush3.xpose.msk.msra.mxu1 %vm102_vm0, %v1968_v9  ;;  %v2389_v9 = vld [vmem:[%s5106_s15] sm:$0xff] }
0x16d7   :  { %3467 = vmatprep.subr.msk.mxu1 %vm102_vm0, %v1967_v1 }
0x16da   :  { %3468 = vmatpush3.xpose.msk.msra.mxu1 %vm102_vm0, %v1967_v1 }
0x16db   :  { %3469 = vmatprep.subr.msk.mxu1 %vm102_vm0, %v1966_v63 }
0x16de   :  { %3470 = vmatpush3.xpose.msk.msra.mxu1 %vm102_vm0, %v1966_v63 }
0x16df   :  { %3471 = vmatprep.subr.msk.mxu1 %vm102_vm0, %v1965_v62 }
0x16e2   :  { %3472 = vmatpush3.xpose.msk.msra.mxu1 %vm102_vm0, %v1965_v62 }
0x16e3   :  { %3473 = vmatprep.subr.msk.mxu1 %vm102_vm0, %v1964_v19 }
0x16e6   :  { %3474 = vmatpush3.xpose.msk.msra.mxu1 %vm102_vm0, %v1964_v19 }
0x16e7   :  { %3475 = vmatprep.subr.msk.mxu1 %vm102_vm0, %v1963_v17 }
0x16ea   :  { %3476 = vmatpush3.xpose.msk.msra.mxu1 %vm102_vm0, %v1963_v17 }
0x16eb   :  { %3477 = vmatprep.subr.msk.mxu1 %vm102_vm0, %v1962_v27 }
0x16ee   :  { %3478 = vmatpush3.xpose.msk.msra.mxu1 %vm102_vm0, %v1962_v27 }
0x16ef   :  { %3479 = vmatprep.subr.msk.mxu1 %vm102_vm0, %v1961_v31 }
0x16f2   :  { %3480 = vmatpush3.xpose.msk.msra.mxu1 %vm102_vm0, %v1961_v31  ;;  %v2391_v31 = vld [vmem:[%s5106_s15 + $0x10] sm:$0xff] }
0x16f3   :  { %3481 = vmatprep.subr.msk.mxu1 %vm102_vm0, %v1960_v47 }
0x16f6   :  { %3482 = vmatpush3.xpose.msk.msra.mxu1 %vm102_vm0, %v1960_v47 }
0x16f7   :  { %3483 = vmatprep.subr.msk.mxu1 %vm102_vm0, %v1959_v37 }
0x16fa   :  { %3484 = vmatpush3.xpose.msk.msra.mxu1 %vm102_vm0, %v1959_v37 }
0x16fb   :  { %3485 = vmatprep.subr.msk.mxu1 %vm102_vm0, %v1958_v40 }
0x16fe   :  { %3486 = vmatpush3.xpose.msk.msra.mxu1 %vm102_vm0, %v1958_v40 }
0x16ff   :  { %3487 = vmatprep.subr.msk.mxu1 %vm102_vm0, %v1957_v43 }
0x1702   :  { %3488 = vmatpush3.xpose.msk.msra.mxu1 %vm102_vm0, %v1957_v43  ;;  %v2393_v43 = vld [vmem:[%s5106_s15 + $0x20] sm:$0xff] }
0x1703   :  { %3489 = vmatprep.subr.msk.mxu1 %vm102_vm0, %v1956_v45 }
0x1706   :  { %3490 = vmatpush3.xpose.msk.msra.mxu1 %vm102_vm0, %v1956_v45 }
0x1707   :  { %3491 = vmatprep.subr.msk.mxu1 %vm102_vm0, %v1955_v48 }
0x170a   :  { %3492 = vmatpush3.xpose.msk.msra.mxu1 %vm102_vm0, %v1955_v48 }
0x170d   :  { %3494 = vmatmul.mubr.msk.f32.vlgmr.msra.gmra.mxu1 %vm102_vm0, %v1787_v52  ;;  %v2396_v52 = vld [vmem:[%s5106_s15 + $0x38] sm:$0xff] }
0x170e   :  { %3496 = vmatprep.mubr.msk.f32.mxu1 %vm102_vm0, %v1788_v51 }
0x1711   :  { %3497 = vmatmul.mubr.msk.f32.gmra.mxu1 %vm102_vm0, %v1789_v10 }
0x1712   :  { %3499 = vmatprep.mubr.msk.f32.mxu1 %vm102_vm0, %v1790_v4 }
0x1715   :  { %3500 = vmatmul.mubr.msk.f32.gmra.mxu1 %vm102_vm0, %v1791_v16 }
0x1716   :  { %3502 = vmatprep.mubr.msk.f32.mxu1 %vm102_vm0, %v1792_v14 }
0x1719   :  { %3503 = vmatmul.mubr.msk.f32.gmra.mxu1 %vm102_vm0, %v1793_v20  ;;  %v2397_v20 = vld [vmem:[%s5106_s15 + $0x40] sm:$0xff] }
0x171a   :  { %3505 = vmatprep.mubr.msk.f32.mxu1 %vm102_vm0, %v1794_v6  ;;  %v2398_v6 = vld [vmem:[%s5106_s15 + $0x48] sm:$0xff] }
0x171d   :  { %3506 = vmatmul.mubr.msk.f32.gmra.mxu1 %vm102_vm0, %v1795_v26 }
0x171e   :  { %3508 = vmatprep.mubr.msk.f32.mxu1 %vm102_vm0, %v1796_v24 }
0x1721   :  { %3509 = vmatmul.mubr.msk.f32.gmra.mxu1 %vm102_vm0, %v1797_v32 }
0x1722   :  { %3511 = vmatprep.mubr.msk.f32.mxu1 %vm102_vm0, %v1798_v30 }
0x1725   :  { %3512 = vmatmul.mubr.msk.f32.gmra.mxu1 %vm102_vm0, %v1799_v41 }
0x1726   :  { %3514 = vmatprep.mubr.msk.f32.mxu1 %vm102_vm0, %v1800_v55  ;;  %v2399_v55 = vld [vmem:[%s5106_s15 + $0x50] sm:$0xff] }
0x1729   :  { %3515 = vmatmul.mubr.msk.f32.gmra.mxu1 %vm102_vm0, %v1801_v56 }
0x17cd   :  { %v3495_v58 = vpop.f32.mrf.mxu1 }
0x17ce   :  { %v2374_v7 = vmul.f32 0.35355338, %v3495_v58 }
0x17cf   :  { %v2294_v60 = vpop.f32.mrf.mxu1 }
0x17d0   :  { %v2373_v1 = vmul.f32 0.35355338, %v2294_v60  ;;  %v4826_v63 = vadd.f32 %v2390_v5, %v2374_v7 }
0x17d1   :  { %v3498_v62 = vpop.f32.mrf.mxu1 }
0x17d2   :  { %v2376_v19 = vmul.f32 0.35355338, %v3498_v62  ;;  %2423 = vmax.xlane.f32.xlu0 %v4826_v63  ;;  %v4829_v17 = vadd.f32 %v2389_v9, %v2373_v1  ;;  %v2402_v9 = vld [vmem:[%s5106_s15 + $0x68] sm:$0xff]  ;;  %v2401_v1 = vld [vmem:[%s5106_s15 + $0x60] sm:$0xff] }
0x17d3   :  { %v2304_v27 = vpop.f32.mrf.mxu1 }
0x17d4   :  { %v2375_v34 = vmul.f32 0.35355338, %v2304_v27  ;;  %2421 = vmax.xlane.f32.xlu1 %v4829_v17  ;;  %v4838_v37 = vadd.f32 %v2392_v29, %v2376_v19 }
0x17d5   :  { %v3501_v47 = vpop.f32.mrf.mxu1 }
0x17d6   :  { %v2378_v46 = vmul.f32 0.35355338, %v3501_v47  ;;  %v4840_v36 = vadd.f32 %v2391_v31, %v2375_v34  ;;  %v2404_v47 = vld [vmem:[%s5106_s15 + $0x78] sm:$0xff] }
0x17d7   :  { %v2314_v40 = vpop.f32.mrf.mxu1 }
0x17d8   :  { %v2377_v42 = vmul.f32 0.35355338, %v2314_v40  ;;  %2427 = vmax.xlane.f32.xlu1 %v4838_v37  ;;  %2425 = vmax.xlane.f32.xlu0 %v4840_v36  ;;  %v4850_v48 = vadd.f32 %v2394_v39, %v2378_v46  ;;  %v2403_v46 = vld [vmem:[%s5106_s15 + $0x70] sm:$0xff] }
0x17d9   :  { %v3504_v45 = vpop.f32.mrf.mxu1 }
0x17da   :  { %v2380_v49 = vmul.f32 0.35355338, %v3504_v45  ;;  %v4852_v50 = vadd.f32 %v2393_v43, %v2377_v42  ;;  %v3439_v42 = vpop.f32.mrf.mxu0 }
0x17db   :  { %v2324_v51 = vpop.f32.mrf.mxu1 }
0x17dc   :  { %v2379_v4 = vmul.f32 0.35355338, %v2324_v51  ;;  %2431 = vmax.xlane.f32.xlu1 %v4850_v48  ;;  %2429 = vmax.xlane.f32.xlu0 %v4852_v50  ;;  %v4862_v14 = vadd.f32 %v2396_v52, %v2380_v49  ;;  %v2037_v45 = vpop.f32.mrf.mxu0 }
0x17dd   :  { %v3507_v10 = vpop.f32.mrf.mxu1 }
0x17de   :  { %v2382_v12 = vmul.f32 0.35355338, %v3507_v10  ;;  %v4864_v16 = vadd.f32 %v2395_v53, %v2379_v4  ;;  %v3442_v49 = vpop.f32.mrf.mxu0 }
0x17df   :  { %v2334_v18 = vpop.f32.mrf.mxu1 }
0x17e0   :  { %v2381_v22 = vmul.f32 0.35355338, %v2334_v18  ;;  %2435 = vmax.xlane.f32.xlu1 %v4862_v14  ;;  %2433 = vmax.xlane.f32.xlu0 %v4864_v16  ;;  %v4874_v28 = vadd.f32 %v2398_v6, %v2382_v12  ;;  %v2047_v51 = vpop.f32.mrf.mxu0 }
0x17e1   :  { %v3510_v24 = vpop.f32.mrf.mxu1 }
0x17e2   :  { %v2384_v26 = vmul.f32 0.35355338, %v3510_v24  ;;  %v4876_v30 = vadd.f32 %v2397_v20, %v2381_v22  ;;  %v3445_v52 = vpop.f32.mrf.mxu0 }
0x17e3   :  { %v2344_v32 = vpop.f32.mrf.mxu1 }
0x17e4   :  { %v2383_v41 = vmul.f32 0.35355338, %v2344_v32  ;;  %2439 = vmax.xlane.f32.xlu1 %v4874_v28  ;;  %2437 = vmax.xlane.f32.xlu0 %v4876_v30  ;;  %v4886_v5 = vadd.f32 %v2400_v54, %v2384_v26  ;;  %v2057_v53 = vpop.f32.mrf.mxu0 }
0x17e5   :  { %v3513_v56 = vpop.f32.mrf.mxu1 }
0x17e6   :  { %v2386_v58 = vmul.f32 0.35355338, %v3513_v56  ;;  %v4888_v7 = vadd.f32 %v2399_v55, %v2383_v41  ;;  %v3448_v4 = vpop.f32.mrf.mxu0 }
0x17e7   :  { %v2354_v60 = vpop.f32.mrf.mxu1 }
0x17e8   :  { %v2385_v62 = vmul.f32 0.35355338, %v2354_v60  ;;  %2443 = vmax.xlane.f32.xlu1 %v4886_v5  ;;  %2441 = vmax.xlane.f32.xlu0 %v4888_v7  ;;  %v4898_v29 = vadd.f32 %v2402_v9, %v2386_v58  ;;  %v2067_v10 = vpop.f32.mrf.mxu0 }
0x17e9   :  { %v3516_v19 = vpop.f32.mrf.mxu1 }
0x17ea   :  { %v2388_v27 = vmul.f32 0.35355338, %v3516_v19  ;;  %v4900_v31 = vadd.f32 %v2401_v1, %v2385_v62  ;;  %v3451_v12 = vpop.f32.mrf.mxu0 }
0x17eb   :  { %v2364_v34 = vpop.f32.mrf.mxu1 }
0x17ec   :  { %v2387_v40 = vmul.f32 0.35355338, %v2364_v34  ;;  %2447 = vmax.xlane.f32.xlu1 %v4898_v29  ;;  %2445 = vmax.xlane.f32.xlu0 %v4900_v31  ;;  %v4910_v39 = vadd.f32 %v2404_v47, %v2388_v27  ;;  %v2077_v18 = vpop.f32.mrf.mxu0 }
0x17ee   :  { %v4912_v43 = vadd.f32 %v2403_v46, %v2387_v40  ;;  %v3454_v6 = vpop.f32.mrf.mxu0 }
0x17ef   :  { %v2127_v58 = vmul.f32 %v3454_v6, %v4694_v11  ;;  %v2121_v11 = vmul.f32 %v3445_v52, %v4742_v33 }
0x17f0   :  { %2451 = vmax.xlane.f32.xlu1 %v4910_v39  ;;  %2449 = vmax.xlane.f32.xlu0 %v4912_v43  ;;  %v2087_v20 = vpop.f32.mrf.mxu0 }
0x17f1   :  { %v2126_v60 = vmul.f32 %v2087_v20, %v4702_v13  ;;  %v2120_v13 = vmul.f32 %v2057_v53, %v4750_v25 }
0x17f2   :  { %v3457_v22 = vpop.f32.mrf.mxu0 }
0x17f3   :  { %v2129_v55 = vmul.f32 %v3457_v22, %v4678_v61  ;;  %v2123_v61 = vmul.f32 %v3448_v4, %v4726_v38  ;;  %v2117_v38 = vmul.f32 %v3439_v42, %v4776_v44 }
0x17f4   :  { %v2097_v24 = vpop.f32.mrf.mxu0 }
0x17f5   :  { %v2128_v56 = vmul.f32 %v2097_v24, %v4686_v3  ;;  %v2122_v3 = vmul.f32 %v2067_v10, %v4734_v23  ;;  %v2116_v23 = vmul.f32 %v2037_v45, %v4650_v8 }
0x17f6   :  { %v3460_v26 = vpop.f32.mrf.mxu0 }
0x17f7   :  { %v2131_v32 = vmul.f32 %v3460_v26, %v4665_v57  ;;  %v2125_v57 = vmul.f32 %v3451_v12, %v4710_v15  ;;  %v2119_v15 = vmul.f32 %v3442_v49, %v4758_v35 }
0x17f8   :  { %v2107_v54 = vpop.f32.mrf.mxu0 }
0x17f9   :  { %v2130_v41 = vmul.f32 %v2107_v54, %v4670_v59  ;;  %3517 = vmatprep.subr.mxu0 %v2131_v32  ;;  %v2124_v59 = vmul.f32 %v2077_v18, %v4718_v21  ;;  %v2118_v21 = vmul.f32 %v2047_v51, %v4767_v2 }
0x17fa   :  { %3518 = vmatpush3.msra.mxu0 %v2131_v32 }
0x17fb   :  { %3519 = vmatprep.subr.mxu0 %v2130_v41 }
0x17fc   :  { %3520 = vmatpush3.msra.mxu0 %v2130_v41 }
0x17fd   :  { %3521 = vmatprep.subr.mxu0 %v2129_v55 }
0x17fe   :  { %3522 = vmatpush3.msra.mxu0 %v2129_v55 }
0x17ff   :  { %3523 = vmatprep.subr.mxu0 %v2128_v56 }
0x1800   :  { %3524 = vmatpush3.msra.mxu0 %v2128_v56 }
0x1801   :  { %3525 = vmatprep.subr.mxu0 %v2127_v58 }
0x1802   :  { %3526 = vmatpush3.msra.mxu0 %v2127_v58 }
0x1803   :  { %3527 = vmatprep.subr.mxu0 %v2126_v60 }
0x1804   :  { %3528 = vmatpush3.msra.mxu0 %v2126_v60 }
0x1805   :  { %3529 = vmatprep.subr.mxu0 %v2125_v57 }
0x1806   :  { %3530 = vmatpush3.msra.mxu0 %v2125_v57 }
0x1807   :  { %3531 = vmatprep.subr.mxu0 %v2124_v59 }
0x1808   :  { %3532 = vmatpush3.msra.mxu0 %v2124_v59 }
0x1809   :  { %3533 = vmatprep.subr.mxu0 %v2123_v61 }
0x180a   :  { %3534 = vmatpush3.msra.mxu0 %v2123_v61 }
0x180b   :  { %3535 = vmatprep.subr.mxu0 %v2122_v3 }
0x180c   :  { %3536 = vmatpush3.msra.mxu0 %v2122_v3 }
0x180d   :  { %3537 = vmatprep.subr.mxu0 %v2121_v11 }
0x180e   :  { %3538 = vmatpush3.msra.mxu0 %v2121_v11 }
0x180f   :  { %3539 = vmatprep.subr.mxu0 %v2120_v13 }
0x1810   :  { %3540 = vmatpush3.msra.mxu0 %v2120_v13 }
0x1811   :  { %3541 = vmatprep.subr.mxu0 %v2119_v15 }
0x1812   :  { %3542 = vmatpush3.msra.mxu0 %v2119_v15 }
0x1813   :  { %3543 = vmatprep.subr.mxu0 %v2118_v21 }
0x1814   :  { %3544 = vmatpush3.msra.mxu0 %v2118_v21 }
0x1815   :  { %3545 = vmatprep.subr.mxu0 %v2117_v38 }
0x1816   :  { %3546 = vmatpush3.msra.mxu0 %v2117_v38 }
0x1817   :  { %3547 = vmatprep.subr.mxu0 %v2116_v23 }
0x1818   :  { %3548 = vmatpush3.msra.mxu0 %v2116_v23 }
0x185b   :  { %v2424_v33 = vpop.xlane.xlu0 %2423 }
0x185c   :  { %v2454_v25 = vsub.f32 %v4826_v63, %v2424_v33 }
0x185d   :  { %v2422_v35 = vpop.xlane.xlu1 %2421 }
0x185e   :  { %v2471_v9 = vmul.f32 1.442695, %v2454_v25  ;;  %v2453_v2 = vsub.f32 %v4829_v17, %v2422_v35 }
0x1860   :  { %3769 = vpow2.f32 %v2471_v9  ;;  %v2469_v1 = vmul.f32 1.442695, %v2453_v2 }
0x1861   :  { %v2428_v44 = vpop.xlane.xlu1 %2427  ;;  %v2426_v62 = vpop.xlane.xlu0 %2425 }
0x1862   :  { %3771 = vpow2.f32 %v2469_v1  ;;  %v2456_v8 = vsub.f32 %v4838_v37, %v2428_v44  ;;  %v2455_v19 = vsub.f32 %v4840_v36, %v2426_v62 }
0x1864   :  { %v2475_v27 = vmul.f32 1.442695, %v2456_v8  ;;  %v2473_v34 = vmul.f32 1.442695, %v2455_v19 }
0x1865   :  { %v2432_v47 = vpop.xlane.xlu1 %2431  ;;  %v2430_v46 = vpop.xlane.xlu0 %2429 }
0x1866   :  { %3773 = vpow2.f32 %v2475_v27  ;;  %v2458_v63 = vsub.f32 %v4850_v48, %v2432_v47  ;;  %v2457_v40 = vsub.f32 %v4852_v50, %v2430_v46 }
0x1867   :  { %3775 = vpow2.f32 %v2473_v34 }
0x1868   :  { %v2479_v17 = vmul.f32 1.442695, %v2458_v63  ;;  %v2477_v42 = vmul.f32 1.442695, %v2457_v40 }
0x1869   :  { %v2436_v45 = vpop.xlane.xlu1 %2435  ;;  %v2434_v49 = vpop.xlane.xlu0 %2433 }
0x186a   :  { %3777 = vpow2.f32 %v2479_v17  ;;  %v2460_v51 = vsub.f32 %v4862_v14, %v2436_v45  ;;  %v2459_v37 = vsub.f32 %v4864_v16, %v2434_v49 }
0x186b   :  { %3779 = vpow2.f32 %v2477_v42 }
0x186c   :  { %v2483_v36 = vmul.f32 1.442695, %v2460_v51  ;;  %v2481_v52 = vmul.f32 1.442695, %v2459_v37 }
0x186d   :  { %v4940_v53 = vpop.eup %3769  ;;  %v2440_v4 = vpop.xlane.xlu1 %2439 }
0x186e   :  { %v2438_v10 = vpop.xlane.xlu0 %2437  ;;  %3781 = vpow2.f32 %v2483_v36  ;;  %v2462_v48 = vsub.f32 %v4874_v28, %v2440_v4  ;;  %2503 = vadd.xlane.f32.xlu1 %v4940_v53 }
0x186f   :  { %v2461_v50 = vsub.f32 %v4876_v30, %v2438_v10  ;;  %v4945_v12 = vpop.eup %3771  ;;  %3783 = vpow2.f32 %v2481_v52 }
0x1870   :  { %v2487_v14 = vmul.f32 1.442695, %v2462_v48  ;;  %2501 = vadd.xlane.f32.xlu0 %v4945_v12 }
0x1871   :  { %v2485_v18 = vmul.f32 1.442695, %v2461_v50  ;;  %v2444_v16 = vpop.xlane.xlu1 %2443 }
0x1872   :  { %v2442_v6 = vpop.xlane.xlu0 %2441  ;;  %3785 = vpow2.f32 %v2487_v14  ;;  %v2464_v20 = vsub.f32 %v4886_v5, %v2444_v16 }
0x1873   :  { %v2463_v22 = vsub.f32 %v4888_v7, %v2442_v6  ;;  %v4950_v24 = vpop.eup %3773  ;;  %3787 = vpow2.f32 %v2485_v18 }
0x1874   :  { %v4952_v28 = vpop.eup %3775  ;;  %v2491_v30 = vmul.f32 1.442695, %v2464_v20  ;;  %2507 = vadd.xlane.f32.xlu1 %v4950_v24 }
0x1875   :  { %v2489_v26 = vmul.f32 1.442695, %v2463_v22  ;;  %2505 = vadd.xlane.f32.xlu0 %v4952_v28  ;;  %v2448_v32 = vpop.xlane.xlu1 %2447 }
0x1876   :  { %v2446_v54 = vpop.xlane.xlu0 %2445  ;;  %3789 = vpow2.f32 %v2491_v30  ;;  %v2466_v55 = vsub.f32 %v4898_v29, %v2448_v32 }
0x1877   :  { %v2465_v5 = vsub.f32 %v4900_v31, %v2446_v54  ;;  %v4958_v41 = vpop.eup %3777  ;;  %3791 = vpow2.f32 %v2489_v26 }
0x1878   :  { %v4960_v7 = vpop.eup %3779  ;;  %v2495_v56 = vmul.f32 1.442695, %v2466_v55  ;;  %2511 = vadd.xlane.f32.xlu1 %v4958_v41 }
0x1879   :  { %v2493_v58 = vmul.f32 1.442695, %v2465_v5  ;;  %2509 = vadd.xlane.f32.xlu0 %v4960_v7  ;;  %v2452_v60 = vpop.xlane.xlu1 %2451 }
0x187a   :  { %v2450_v57 = vpop.xlane.xlu0 %2449  ;;  %3793 = vpow2.f32 %v2495_v56  ;;  %v2468_v59 = vsub.f32 %v4910_v39, %v2452_v60 }
0x187b   :  { %v2467_v29 = vsub.f32 %v4912_v43, %v2450_v57  ;;  %v4966_v61 = vpop.eup %3781  ;;  %3795 = vpow2.f32 %v2493_v58  ;;  %v2710_v57 = vld [vmem:[%s5104_s13] sm:$0xff] }
0x187c   :  { %v4968_v31 = vpop.eup %3783  ;;  %v2499_v3 = vmul.f32 1.442695, %v2468_v59  ;;  %2515 = vadd.xlane.f32.xlu1 %v4966_v61  ;;  %3605 = vmatprep.mubr.f32.mxu1 %v2710_v57  ;;  %v2794_v59 = vld [vmem:[%s5099_s8 + $0x38] sm:$0xff] }
0x187d   :  { %v2497_v11 = vmul.f32 1.442695, %v2467_v29  ;;  %2513 = vadd.xlane.f32.xlu0 %v4968_v31  ;;  %v2793_v29 = vld [vmem:[%s5099_s8 + $0x30] sm:$0xff]  ;;  %3608 = vmatprep.subr.mxu0 %v2794_v59 }
0x187e   :  { %3797 = vpow2.f32 %v2499_v3  ;;  %v2790_v3 = vld [vmem:[%s5099_s8 + $0x18] sm:$0xff] }
0x187f   :  { %v4972_v13 = vpop.eup %3785  ;;  %3799 = vpow2.f32 %v2497_v11  ;;  %v2789_v11 = vld [vmem:[%s5099_s8 + $0x10] sm:$0xff] }
0x1880   :  { %v4974_v15 = vpop.eup %3787  ;;  %2519 = vadd.xlane.f32.xlu1 %v4972_v13 }
0x1881   :  { %2517 = vadd.xlane.f32.xlu0 %v4974_v15 }
0x1883   :  { %v4978_v39 = vpop.eup %3789 }
0x1884   :  { %v4980_v43 = vpop.eup %3791  ;;  %2523 = vadd.xlane.f32.xlu1 %v4978_v39 }
0x1885   :  { %2521 = vadd.xlane.f32.xlu0 %v4980_v43 }
0x1887   :  { %v4984_v21 = vpop.eup %3793 }
0x1888   :  { %v4986_v38 = vpop.eup %3795  ;;  %2527 = vadd.xlane.f32.xlu1 %v4984_v21 }
0x1889   :  { %2525 = vadd.xlane.f32.xlu0 %v4986_v38 }
0x188b   :  { %v4990_v23 = vpop.eup %3797 }
0x188c   :  { %v4992_v33 = vpop.eup %3799  ;;  %2531 = vadd.xlane.f32.xlu1 %v4990_v23 }
0x188d   :  { %2529 = vadd.xlane.f32.xlu0 %v4992_v33 }
0x18f7   :  { %v2504_v25 = vpop.xlane.xlu1 %2503 }
0x18f8   :  { %3801 = vrcp.f32 %v2504_v25 }
0x18f9   :  { %v2502_v35 = vpop.xlane.xlu0 %2501 }
0x18fa   :  { %3803 = vrcp.f32 %v2502_v35 }
0x18fd   :  { %v2508_v9 = vpop.xlane.xlu1 %2507 }
0x18fe   :  { %3805 = vrcp.f32 %v2508_v9  ;;  %v2506_v2 = vpop.xlane.xlu0 %2505 }
0x18ff   :  { %3807 = vrcp.f32 %v2506_v2 }
0x1901   :  { %v2512_v1 = vpop.xlane.xlu1 %2511 }
0x1902   :  { %3809 = vrcp.f32 %v2512_v1  ;;  %v2510_v44 = vpop.xlane.xlu0 %2509 }
0x1903   :  { %3811 = vrcp.f32 %v2510_v44 }
0x1905   :  { %v2516_v62 = vpop.xlane.xlu1 %2515  ;;  %v3802_v8 = vpop.eup %3801 }
0x1906   :  { %3813 = vrcp.f32 %v2516_v62  ;;  %v2514_v19 = vpop.xlane.xlu0 %2513  ;;  %v2550_v46 = vmul.f32 %v3802_v8, %v4940_v53 }
0x1907   :  { %v3804_v27 = vpop.eup %3803  ;;  %3815 = vrcp.f32 %v2514_v19  ;;  %v2711_v19 = vld [vmem:[%s5104_s13 + $0x8] sm:$0xff] }
0x1908   :  { %v2549_v34 = vmul.f32 %v3804_v27, %v4945_v12  ;;  %v2788_v27 = vld [vmem:[%s5099_s8 + $0x8] sm:$0xff] }
0x1909   :  { %v2520_v47 = vpop.xlane.xlu1 %2519 }
0x190a   :  { %3817 = vrcp.f32 %v2520_v47  ;;  %v2518_v63 = vpop.xlane.xlu0 %2517  ;;  %3549 = vmatprep.mubr.f32.mxu0 %v2549_v34  ;;  %v2787_v34 = vld [vmem:[%s5099_s8] sm:$0xff] }
0x190b   :  { %v3806_v40 = vpop.eup %3805  ;;  %3819 = vrcp.f32 %v2518_v63  ;;  %3550 = vmatmul.mubr.f32.vlgmr.msra.gmra.mxu0 %v2550_v46  ;;  %v2964_v63 = vld [vmem:[%s5101_s10 + $0x38] sm:$0xff] }
0x190c   :  { %v3808_v17 = vpop.eup %3807  ;;  %v2552_v42 = vmul.f32 %v3806_v40, %v4950_v24  ;;  %3609 = vmatpush3.msra.mxu0 %v2794_v59  ;;  %v2963_v40 = vld [vmem:[%s5101_s10 + $0x30] sm:$0xff] }
0x190d   :  { %v2524_v45 = vpop.xlane.xlu1 %2523  ;;  %v2551_v49 = vmul.f32 %v3808_v17, %v4952_v28  ;;  %3610 = vmatprep.subr.mxu0 %v2793_v29  ;;  %v2962_v17 = vld [vmem:[%s5101_s10 + $0x28] sm:$0xff] }
0x190e   :  { %3821 = vrcp.f32 %v2524_v45  ;;  %v2522_v51 = vpop.xlane.xlu0 %2521  ;;  %3611 = vmatpush3.msra.mxu0 %v2793_v29  ;;  %v2960_v45 = vld [vmem:[%s5101_s10 + $0x18] sm:$0xff] }
0x190f   :  { %v3810_v37 = vpop.eup %3809  ;;  %3823 = vrcp.f32 %v2522_v51  ;;  %3552 = vmatprep.mubr.f32.mxu0 %v2551_v49  ;;  %v2959_v49 = vld [vmem:[%s5101_s10 + $0x10] sm:$0xff]  ;;  %v2958_v51 = vld [vmem:[%s5101_s10 + $0x8] sm:$0xff] }
0x1910   :  { %v3812_v36 = vpop.eup %3811  ;;  %3553 = vmatmul.mubr.f32.gmra.mxu0 %v2552_v42  ;;  %v2554_v52 = vmul.f32 %v3810_v37, %v4958_v41  ;;  %v2961_v42 = vld [vmem:[%s5101_s10 + $0x20] sm:$0xff] }
0x1911   :  { %v2528_v53 = vpop.xlane.xlu1 %2527  ;;  %v2553_v4 = vmul.f32 %v3812_v36, %v4960_v7  ;;  %v3173_v37 = vld [vmem:[%s5100_s9] ss:$0 sm:$0xff]  ;;  %s3882_s9 = smov [#allocation6]  }
0x1912   :  { %3825 = vrcp.f32 %v2528_v53  ;;  %v2526_v10 = vpop.xlane.xlu0 %2525  ;;  %s3053_s4 = sshll.u32 %s3882_s9, 4  ;;  %s3054_s4 = int_to_ptr.vmem [resolvable:$true] %s3053_s4 }
0x1913   :  { %v3814_v48 = vpop.eup %3813  ;;  %3827 = vrcp.f32 %v2526_v10  ;;  %3555 = vmatprep.mubr.f32.mxu0 %v2553_v4  ;;  %v2883_v10 = vld [vmem:[%s5108_s17] sm:$0x3]  ;;  %s3853_s17 = scalar_lea.vmem %s3054_s4, 32  ;;  %p3858_p6 = scmp.lt.s32.totalorder %s3054_s4, %s3054_s4 }
0x1914   :  { %v3816_v50 = vpop.eup %3815  ;;  %3556 = vmatmul.mubr.f32.gmra.mxu0 %v2554_v52  ;;  %v2556_v12 = vmul.f32 %v3814_v48, %v4966_v61  ;;  %v2792_v61 = vld [vmem:[%s5099_s8 + $0x28] sm:$0xff]  ;;  %v2957_v48 = vld [vmem:[%s5101_s10] sm:$0xff]  ;;  %p3854_p5 = scmp.ne.s32.totalorder %s3054_s4, %s3853_s17  ;;  %p3859_p7 = scmp.lt.s32.totalorder %s3853_s17, %s3853_s17 }
0x1915   :  { %v2532_v14 = vpop.xlane.xlu1 %2531  ;;  %v2555_v18 = vmul.f32 %v3816_v50, %v4968_v31  ;;  %v2791_v31 = vld [vmem:[%s5099_s8 + $0x20] sm:$0xff]  ;;  %3612 = vmatprep.subr.mxu0 %v2792_v61 }
0x1916   :  { %3829 = vrcp.f32 %v2532_v14  ;;  %v2530_v16 = vpop.xlane.xlu0 %2529  ;;  %3613 = vmatpush3.msra.mxu0 %v2792_v61  ;;  %v3177_v14 = vld [vmem:[#allocation3] ss:$0 sm:$0xff]  ;;  %p3860_p8 = por %p3859_p7, %p3858_p6 }
0x1917   :  { %v3818_v6 = vpop.eup %3817  ;;  %3831 = vrcp.f32 %v2530_v16  ;;  %3558 = vmatprep.mubr.f32.mxu0 %v2555_v18  ;;  %3614 = vmatprep.subr.mxu0 %v2791_v31 }
0x1918   :  { %v3820_v20 = vpop.eup %3819  ;;  %3559 = vmatmul.mubr.f32.gmra.mxu0 %v2556_v12  ;;  %v2558_v22 = vmul.f32 %v3818_v6, %v4972_v13  ;;  %p3861_p9 = pnand %p3860_p8, %p3854_p5 }
0x1919   :  { %v2557_v24 = vmul.f32 %v3820_v20, %v4974_v15  ;;  %3615 = vmatpush3.msra.mxu0 %v2791_v31 }
0x191a   :  { %3616 = vmatprep.subr.mxu0 %v2790_v3 }
0x191b   :  { %v3822_v28 = vpop.eup %3821  ;;  %3561 = vmatprep.mubr.f32.mxu0 %v2557_v24  ;;  %3617 = vmatpush3.msra.mxu0 %v2790_v3 }
0x191c   :  { %v3824_v30 = vpop.eup %3823  ;;  %3562 = vmatmul.mubr.f32.gmra.mxu0 %v2558_v22  ;;  %v2560_v26 = vmul.f32 %v3822_v28, %v4978_v39  ;;  %3618 = vmatprep.subr.mxu0 %v2789_v11 }
0x191d   :  { %v2559_v32 = vmul.f32 %v3824_v30, %v4980_v43  ;;  %3619 = vmatpush3.msra.mxu0 %v2789_v11 }
0x191e   :  { %3620 = vmatprep.subr.mxu0 %v2788_v27 }
0x191f   :  { %v3826_v54 = vpop.eup %3825  ;;  %3564 = vmatprep.mubr.f32.mxu0 %v2559_v32  ;;  %3621 = vmatpush3.msra.mxu0 %v2788_v27 }
0x1920   :  { %v3828_v55 = vpop.eup %3827  ;;  %3565 = vmatmul.mubr.f32.gmra.mxu0 %v2560_v26  ;;  %v2562_v5 = vmul.f32 %v3826_v54, %v4984_v21  ;;  %3622 = vmatprep.subr.mxu0 %v2787_v34 }
0x1921   :  { %v2561_v41 = vmul.f32 %v3828_v55, %v4986_v38  ;;  %3623 = vmatpush3.msra.mxu0 %v2787_v34 }
0x1922   :  { %3634 = vmatprep.subr.mxu0 %v3878_v0 }
0x1923   :  { %v3830_v7 = vpop.eup %3829  ;;  %3567 = vmatprep.mubr.f32.mxu0 %v2561_v41 }
0x1924   :  { %v3832_v56 = vpop.eup %3831  ;;  %3568 = vmatmul.mubr.f32.gmra.mxu0 %v2562_v5  ;;  %v2564_v58 = vmul.f32 %v3830_v7, %v4990_v23 }
0x1925   :  { %v2563_v60 = vmul.f32 %v3832_v56, %v4992_v33 }
0x1927   :  { %3570 = vmatprep.mubr.f32.mxu0 %v2563_v60 }
0x1928   :  { %3571 = vmatmul.mubr.f32.gmra.mxu0 %v2564_v58 }
0x19cb   :  { %v3551_v13 = vpop.f32.mrf.mxu0 }
0x19cd   :  { %v2631_v15 = vpop.f32.mrf.mxu0 }
0x19d0   :  { %v3554_v39 = vpop.f32.mrf.mxu0 }
0x19d2   :  { %v2641_v43 = vpop.f32.mrf.mxu0 }
0x19d4   :  { %v3557_v21 = vpop.f32.mrf.mxu0 }
0x19d6   :  { %v2651_v38 = vpop.f32.mrf.mxu0 }
0x19d8   :  { %v3560_v23 = vpop.f32.mrf.mxu0 }
0x19da   :  { %v2661_v33 = vpop.f32.mrf.mxu0 }
0x19dc   :  { %v3563_v25 = vpop.f32.mrf.mxu0 }
0x19de   :  { %v2671_v35 = vpop.f32.mrf.mxu0 }
0x19e0   :  { %v3566_v9 = vpop.f32.mrf.mxu0 }
0x19e2   :  { %v2681_v2 = vpop.f32.mrf.mxu0 }
0x19e4   :  { %v3569_v1 = vpop.f32.mrf.mxu0 }
0x19e6   :  { %v2691_v44 = vpop.f32.mrf.mxu0 }
0x19e8   :  { %v3572_v62 = vpop.f32.mrf.mxu0 }
0x19e9   :  { %3573 = vmatprep.subr.mxu1 %v3572_v62 }
0x19ea   :  { %v2701_v8 = vpop.f32.mrf.mxu0  ;;  %3574 = vmatpush3.msra.mxu1 %v3572_v62 }
0x19eb   :  { %3575 = vmatprep.subr.mxu1 %v2701_v8 }
0x19ec   :  { %3576 = vmatpush3.msra.mxu1 %v2701_v8 }
0x19ed   :  { %3577 = vmatprep.subr.mxu1 %v3569_v1 }
0x19ee   :  { %3578 = vmatpush3.msra.mxu1 %v3569_v1 }
0x19ef   :  { %3579 = vmatprep.subr.mxu1 %v2691_v44 }
0x19f0   :  { %3580 = vmatpush3.msra.mxu1 %v2691_v44 }
0x19f1   :  { %3581 = vmatprep.subr.mxu1 %v3566_v9 }
0x19f2   :  { %3582 = vmatpush3.msra.mxu1 %v3566_v9 }
0x19f3   :  { %3583 = vmatprep.subr.mxu1 %v2681_v2 }
0x19f4   :  { %3584 = vmatpush3.msra.mxu1 %v2681_v2 }
0x19f5   :  { %3585 = vmatprep.subr.mxu1 %v3563_v25 }
0x19f6   :  { %3586 = vmatpush3.msra.mxu1 %v3563_v25 }
0x19f7   :  { %3587 = vmatprep.subr.mxu1 %v2671_v35 }
0x19f8   :  { %3588 = vmatpush3.msra.mxu1 %v2671_v35 }
0x19f9   :  { %3589 = vmatprep.subr.mxu1 %v3560_v23 }
0x19fa   :  { %3590 = vmatpush3.msra.mxu1 %v3560_v23 }
0x19fb   :  { %3591 = vmatprep.subr.mxu1 %v2661_v33 }
0x19fc   :  { %3592 = vmatpush3.msra.mxu1 %v2661_v33 }
0x19fd   :  { %3593 = vmatprep.subr.mxu1 %v3557_v21 }
0x19fe   :  { %3594 = vmatpush3.msra.mxu1 %v3557_v21 }
0x19ff   :  { %3595 = vmatprep.subr.mxu1 %v2651_v38 }
0x1a00   :  { %3596 = vmatpush3.msra.mxu1 %v2651_v38 }
0x1a01   :  { %3597 = vmatprep.subr.mxu1 %v3554_v39 }
0x1a02   :  { %3598 = vmatpush3.msra.mxu1 %v3554_v39 }
0x1a03   :  { %3599 = vmatprep.subr.mxu1 %v2641_v43 }
0x1a04   :  { %3600 = vmatpush3.msra.mxu1 %v2641_v43 }
0x1a05   :  { %3601 = vmatprep.subr.mxu1 %v3551_v13 }
0x1a06   :  { %3602 = vmatpush3.msra.mxu1 %v3551_v13 }
0x1a07   :  { %3603 = vmatprep.subr.mxu1 %v2631_v15 }
0x1a08   :  { %3604 = vmatpush3.msra.mxu1 %v2631_v15 }
0x1a09   :  { %3606 = vmatmul.mubr.f32.vlgmr.msra.gmra.mxu1 %v2711_v19  ;;  %3627 = vmatprep.subr.mxu1 %v3878_v0 }
0x1a0a   :  { %3631 = vmatprep.mubr.msk.f32.mxu1 %vm3881_vm11, %v3878_v0 }
0x1ac9   :  { %v3607_v47 = vpop.f32.mrf.mxu1 }
0x1acb   :  { %v2778_v46 = vpop.f32.mrf.mxu1 }
0x1acc   :  { %3624 = vmatprep.mubr.msk.f32.mxu0 %vm102_vm0, %v2778_v46 }
0x1acd   :  { %3625 = vmatmul.mubr.msk.f32.vlgmr.msra.gmra.mxu0 %vm102_vm0, %v3607_v47 }
0x1ace   :  { %3650 = vmatprep.mubr.msk.f32.mxu0 %vm3881_vm11, %v3878_v0  ;;  %3635 = vmatpush3.msra.mxu0 %v2964_v63 }
0x1acf   :  { %3636 = vmatprep.subr.mxu0 %v3878_v0 }
0x1ad0   :  { %3637 = vmatpush3.msra.mxu0 %v2963_v40 }
0x1ad1   :  { %3638 = vmatprep.subr.mxu0 %v3878_v0 }
0x1ad2   :  { %3639 = vmatpush3.msra.mxu0 %v2962_v17 }
0x1ad3   :  { %3640 = vmatprep.subr.mxu0 %v3878_v0 }
0x1ad4   :  { %3641 = vmatpush3.msra.mxu0 %v2961_v42 }
0x1ad5   :  { %3642 = vmatprep.subr.mxu0 %v3878_v0 }
0x1ad6   :  { %3643 = vmatpush3.msra.mxu0 %v2960_v45 }
0x1ad7   :  { %3644 = vmatprep.subr.mxu0 %v3878_v0 }
0x1ad8   :  { %3645 = vmatpush3.msra.mxu0 %v2959_v49 }
0x1ad9   :  { %3646 = vmatprep.subr.mxu0 %v3878_v0 }
0x1ada   :  { %3647 = vmatpush3.msra.mxu0 %v2958_v51 }
0x1adb   :  { %3648 = vmatprep.subr.mxu0 %v3878_v0 }
0x1adc   :  { %3649 = vmatpush3.msra.mxu0 %v2957_v48 }
0x1b8d   :  { %v3626_v36 = vpop.f32.mrf.mxu0 }
0x1b8e   :  { %v2880_v52 = vadd.f32 %v3626_v36, %v3173_v37 }
0x1b8f   :  { %v2874_v53 = vpop.f32.mrf.mxu0 }
0x1b90   :  { %v2875_v4 = vadd.f32 %v3173_v37, %v2874_v53  ;;  %3628 = vmatpush3.msra.mxu1 %v2880_v52 }
0x1b91   :  { %3629 = vmatprep.subr.mxu1 %v3878_v0 }
0x1b92   :  { %3630 = vmatpush3.msra.mxu1 %v2875_v4 }
0x1b93   :  { %3632 = vmatmul.mubr.msk.f32.vlgmr.msra.gmra.mxu1 %vm1352_vm9, %v2883_v10 }
0x1c53   :  { %v2953_v50 = vpop.f32.mrf.mxu1 }
0x1c54   :  { %3651 = vmatmul.mubr.msk.f32.vlgmr.msra.gmra.mxu0 %vm102_vm0, %v2953_v50 }
0x1c55   :  { %v3633_v12 = vpop.f32.mrf.mxu1 }
0x1d14   :  { %v3041_v18 = vpop.f32.mrf.mxu0 }
0x1d15   :  { %v3042_v16 = vadd.f32 %v3177_v14, %v3041_v18 }
0x1d16   :  { %v3652_v0 = vpop.f32.mrf.mxu0 }
0x1d17   :  { %3046 = vst.msk [vmem:[#allocation6] sm:$0x3] %vm3045_vm12, %v3042_v16 }
0x1d18   :  { %3864 = shalt.err (!%p3861_p9)
}
0x1d19   :  { %3056 = dma.vmem_to_hbm [thread:$0]  %s3054_s4, 32, %s5109_s18, [#allocation5]  }
0x1d1a   :  { %3875 = dma.done.wait [#allocation5], 32  }
0x1d1b   :  { %3876 = vsyncadd [#allocation5], 4294967264 }
0x1d1c   :  { %3060 = vsyncpa [#allocation4], 1 }
0x1d1d   :  { %3061 = vsyncpa [#allocation5], 1 }

</bundles_post_ra>
